<compile_context>
chip_gen: v7x
topology: tpu7x:2x2x1
jax: 0.10.0
libtpu: 0.0.40
codegen_flags: <defaults>
</compile_context>

<pallas_src>
import jax
import jax.numpy as jnp
from jax.experimental import pallas as pl
from jax.experimental.pallas import tpu as pltpu

EPS = 1e-5
OUT_PAD = 128          # lane-dense padded output width
VEC_ROWS = 8           # packed per-feature-vector slab rows
VEC_COLS = 512         # packed per-feature-vector slab cols (max hidden width)


def mlp_kernel(x_ref, w1_ref, w2_ref, w3_ref, w4_ref, vec_ref, o_ref):
    """Fused MLP forward: 4 matmuls + 3 (batchnorm + relu), all in VMEM.

    vec_ref rows (zero padded to 512 lanes):
      0: gamma1(64)  1: beta1(64)
      2: gamma2(256) 3: beta2(256)
      4: gamma3(512) 5: beta3(512)
      6: bias4 (padded to OUT_PAD)   7: unused
    """
    g1 = vec_ref[0:1, 0:64]
    be1 = vec_ref[1:2, 0:64]
    g2 = vec_ref[2:3, 0:256]
    be2 = vec_ref[3:4, 0:256]
    g3 = vec_ref[4:5, 0:512]
    be3 = vec_ref[5:6, 0:512]
    b4 = vec_ref[6:7, 0:OUT_PAD]

    def bn_relu(h, gamma, beta):
        # Training-mode BatchNorm1d statistics over the batch dim (axis 0),
        # biased variance (PyTorch uses biased var for normalization).
        mean = jnp.mean(h, axis=0, keepdims=True)
        d = h - mean
        var = jnp.mean(d * d, axis=0, keepdims=True)
        # Fold the affine: one per-feature scale/shift, then a single
        # multiply-add per element before the ReLU.
        scale = gamma * jax.lax.rsqrt(var + EPS)      # EUP rsqrt
        shift = beta - mean * scale
        return jnp.maximum(h * scale + shift, 0.0)

    x = x_ref[...].astype(jnp.float32)  # mirrors x = x.float()

    # Linear biases b1..b3 are omitted: they are cancelled exactly by the
    # BatchNorm mean subtraction that immediately follows each Linear.
    h = bn_relu(jnp.dot(x, w1_ref[...], preferred_element_type=jnp.float32), g1, be1)
    h = bn_relu(jnp.dot(h, w2_ref[...], preferred_element_type=jnp.float32), g2, be2)
    h = bn_relu(jnp.dot(h, w3_ref[...], preferred_element_type=jnp.float32), g3, be3)

    out = jnp.dot(h, w4_ref[...], preferred_element_type=jnp.float32) + b4
    o_ref[...] = out.astype(o_ref.dtype)   # (N, OUT_PAD) lane-dense store


def nn_regression_forward(x, params):
    """Wrapper: whole problem fits VMEM (~2 MiB of weights), so the entire
    MLP runs as one grid-less pallas_call with 6 inputs and a lane-dense
    (N, 128) output slab that is sliced back to (N, out_dim)."""
    (w1, b1, g1, be1,
     w2, b2, g2, be2,
     w3, b3, g3, be3,
     w4, b4) = params
    del b1, b2, b3  # mathematically dead under training-mode BatchNorm

    n = x.shape[0]
    out_dim = w4.shape[1]

    # Pad the final Linear to a lane-dense 128-wide output (zero columns).
    w4p = jnp.zeros((w4.shape[0], OUT_PAD), jnp.float32).at[:, :out_dim].set(w4)

    # Pack all per-feature vectors into one small VMEM slab (single DMA).
    vecs = jnp.zeros((VEC_ROWS, VEC_COLS), jnp.float32)
    vecs = vecs.at[0, :64].set(g1[0])
    vecs = vecs.at[1, :64].set(be1[0])
    vecs = vecs.at[2, :256].set(g2[0])
    vecs = vecs.at[3, :256].set(be2[0])
    vecs = vecs.at[4, :512].set(g3[0])
    vecs = vecs.at[5, :512].set(be3[0])
    vecs = vecs.at[6, :out_dim].set(b4[0])

    in_dim = w1.shape[0]
    flops = 2 * n * (in_dim * 64 + 64 * 256 + 256 * 512 + 512 * OUT_PAD)
    bytes_accessed = 4 * (x.size + w1.size + w2.size + w3.size
                          + w4p.size + vecs.size + n * OUT_PAD)

    out_padded = pl.pallas_call(
        mlp_kernel,
        out_shape=jax.ShapeDtypeStruct((n, OUT_PAD), jnp.float32),
        in_specs=[pl.BlockSpec(memory_space=pltpu.MemorySpace.VMEM)] * 6,
        out_specs=pl.BlockSpec(memory_space=pltpu.MemorySpace.VMEM),
        cost_estimate=pl.CostEstimate(
            flops=flops,
            transcendentals=64 + 256 + 512,   # one rsqrt per BN feature
            bytes_accessed=bytes_accessed),
    )(x, w1, w2, w3, w4p, vecs)

    return out_padded[:, :out_dim]


def make_params(key, input_size, output_size):
    """Deterministic parameter init (PyTorch-ish uniform fan_in scaling).
    Linear weights stored as (in, out); biases / BN params as (1, dim)."""
    dims = [(input_size, 64), (64, 256), (256, 512), (512, output_size)]
    params = []
    for i, (fan_in, fan_out) in enumerate(dims):
        key, kw, kb = jax.random.split(key, 3)
        bound = 1.0 / jnp.sqrt(fan_in)
        w = jax.random.uniform(kw, (fan_in, fan_out), jnp.float32, -bound, bound)
        b = jax.random.uniform(kb, (1, fan_out), jnp.float32, -bound, bound)
        params += [w, b]
        if i < 3:  # BN after the first three Linear layers
            gamma = jnp.ones((1, fan_out), jnp.float32)
            beta = jnp.zeros((1, fan_out), jnp.float32)
            params += [gamma, beta]
    return tuple(params)


def reference_forward(x, params):
    """Pure-JAX reference (faithful PyTorch semantics, incl. b1..b3)."""
    (w1, b1, g1, be1, w2, b2, g2, be2, w3, b3, g3, be3, w4, b4) = params

    def bn_relu(h, g, be):
        mean = jnp.mean(h, axis=0, keepdims=True)
        var = jnp.mean((h - mean) ** 2, axis=0, keepdims=True)
        return jnp.maximum((h - mean) / jnp.sqrt(var + EPS) * g + be, 0.0)

    h = x.astype(jnp.float32)
    h = bn_relu(h @ w1 + b1, g1, be1)
    h = bn_relu(h @ w2 + b2, g2, be2)
    h = bn_relu(h @ w3 + b3, g3, be3)
    return h @ w4 + b4


if __name__ == "__main__":
    batch = 16          # BatchNorm1d training mode needs batch > 1
    input_size = 32     # input_train.shape[1]
    output_size = 8     # output_train.shape[1]

    key = jax.random.PRNGKey(0)
    key, kx = jax.random.split(key)
    x = jax.random.normal(kx, (batch, input_size), jnp.float32)

    params = make_params(key, input_size, output_size)

    out = nn_regression_forward(x, params)
    out = jax.block_until_ready(out)

    ref = reference_forward(x, params)
    assert out.shape == (batch, output_size)
    assert jnp.allclose(out, ref, atol=1e-3, rtol=1e-3), "mismatch vs reference"

    print("KERNEL_OK")
</pallas_src>

<mosaic_0001>
module attributes {stable_mosaic.version = 11 : i64} {
  func.func @mlp_kernel(%arg0: memref<16x32xf32, #tpu.memory_space<vmem>>, %arg1: memref<32x64xf32, #tpu.memory_space<vmem>>, %arg2: memref<64x256xf32, #tpu.memory_space<vmem>>, %arg3: memref<256x512xf32, #tpu.memory_space<vmem>>, %arg4: memref<512x128xf32, #tpu.memory_space<vmem>>, %arg5: memref<8x512xf32, #tpu.memory_space<vmem>>, %arg6: memref<16x128xf32, #tpu.memory_space<vmem>>) attributes {dimension_semantics = [], scalar_prefetch = 0 : i64, scratch_operands = 0 : i64, tpu.core_type = #tpu.core_type<tc>} {
    %c0 = arith.constant 0 : index
    %c0_0 = arith.constant 0 : index
    %0 = vector.load %arg5[%c0, %c0_0] : memref<8x512xf32, #tpu.memory_space<vmem>>, vector<1x64xf32>
    %c1 = arith.constant 1 : index
    %c0_1 = arith.constant 0 : index
    %1 = vector.load %arg5[%c1, %c0_1] : memref<8x512xf32, #tpu.memory_space<vmem>>, vector<1x64xf32>
    %c2 = arith.constant 2 : index
    %c0_2 = arith.constant 0 : index
    %2 = vector.load %arg5[%c2, %c0_2] : memref<8x512xf32, #tpu.memory_space<vmem>>, vector<1x256xf32>
    %c3 = arith.constant 3 : index
    %c0_3 = arith.constant 0 : index
    %3 = vector.load %arg5[%c3, %c0_3] : memref<8x512xf32, #tpu.memory_space<vmem>>, vector<1x256xf32>
    %c4 = arith.constant 4 : index
    %c0_4 = arith.constant 0 : index
    %4 = vector.load %arg5[%c4, %c0_4] : memref<8x512xf32, #tpu.memory_space<vmem>>, vector<1x512xf32>
    %c5 = arith.constant 5 : index
    %c0_5 = arith.constant 0 : index
    %5 = vector.load %arg5[%c5, %c0_5] : memref<8x512xf32, #tpu.memory_space<vmem>>, vector<1x512xf32>
    %c6 = arith.constant 6 : index
    %c0_6 = arith.constant 0 : index
    %6 = vector.load %arg5[%c6, %c0_6] : memref<8x512xf32, #tpu.memory_space<vmem>>, vector<1x128xf32>
    %c0_7 = arith.constant 0 : index
    %c0_8 = arith.constant 0 : index
    %7 = vector.load %arg0[%c0_7, %c0_8] : memref<16x32xf32, #tpu.memory_space<vmem>>, vector<16x32xf32>
    %c0_9 = arith.constant 0 : index
    %c0_10 = arith.constant 0 : index
    %8 = vector.load %arg1[%c0_9, %c0_10] : memref<32x64xf32, #tpu.memory_space<vmem>>, vector<32x64xf32>
    %cst = arith.constant dense<0.000000e+00> : vector<16x64xf32>
    %9 = tpu.matmul %7, %8, %cst {dimension_numbers = #tpu.dot_dimension_numbers<[1], [0], [0], [1], [0, 0, 1, 1], [], []>} : vector<16x32xf32>, vector<32x64xf32>, vector<16x64xf32> -> vector<16x64xf32>
    %cst_11 = arith.constant dense<0.000000e+00> : vector<64xf32>
    %10 = vector.multi_reduction <add>, %9, %cst_11 [0] : vector<16x64xf32> to vector<64xf32>
    %11 = vector.shape_cast %10 : vector<64xf32> to vector<1x64xf32>
    %cst_12 = arith.constant 1.600000e+01 : f32
    %12 = vector.broadcast %cst_12 : f32 to vector<1x64xf32>
    %13 = arith.divf %11, %12 : vector<1x64xf32>
    %14 = vector.broadcast %13 : vector<1x64xf32> to vector<16x64xf32>
    %15 = arith.subf %9, %14 : vector<16x64xf32>
    %16 = arith.mulf %15, %15 : vector<16x64xf32>
    %cst_13 = arith.constant dense<0.000000e+00> : vector<64xf32>
    %17 = vector.multi_reduction <add>, %16, %cst_13 [0] : vector<16x64xf32> to vector<64xf32>
    %18 = vector.shape_cast %17 : vector<64xf32> to vector<1x64xf32>
    %cst_14 = arith.constant 1.600000e+01 : f32
    %19 = vector.broadcast %cst_14 : f32 to vector<1x64xf32>
    %20 = arith.divf %18, %19 : vector<1x64xf32>
    %cst_15 = arith.constant 9.99999974E-6 : f32
    %21 = vector.broadcast %cst_15 : f32 to vector<1x64xf32>
    %22 = arith.addf %20, %21 : vector<1x64xf32>
    %23 = math.rsqrt %22 : vector<1x64xf32>
    %24 = arith.mulf %0, %23 : vector<1x64xf32>
    %25 = arith.mulf %13, %24 : vector<1x64xf32>
    %26 = arith.subf %1, %25 : vector<1x64xf32>
    %27 = vector.broadcast %24 : vector<1x64xf32> to vector<16x64xf32>
    %28 = arith.mulf %9, %27 : vector<16x64xf32>
    %29 = vector.broadcast %26 : vector<1x64xf32> to vector<16x64xf32>
    %30 = arith.addf %28, %29 : vector<16x64xf32>
    %cst_16 = arith.constant 0.000000e+00 : f32
    %31 = vector.broadcast %cst_16 : f32 to vector<16x64xf32>
    %32 = arith.maximumf %30, %31 : vector<16x64xf32>
    %c0_17 = arith.constant 0 : index
    %c0_18 = arith.constant 0 : index
    %33 = vector.load %arg2[%c0_17, %c0_18] : memref<64x256xf32, #tpu.memory_space<vmem>>, vector<64x256xf32>
    %cst_19 = arith.constant dense<0.000000e+00> : vector<16x256xf32>
    %34 = tpu.matmul %32, %33, %cst_19 {dimension_numbers = #tpu.dot_dimension_numbers<[1], [0], [0], [1], [0, 0, 1, 1], [], []>} : vector<16x64xf32>, vector<64x256xf32>, vector<16x256xf32> -> vector<16x256xf32>
    %cst_20 = arith.constant dense<0.000000e+00> : vector<256xf32>
    %35 = vector.multi_reduction <add>, %34, %cst_20 [0] : vector<16x256xf32> to vector<256xf32>
    %36 = vector.shape_cast %35 : vector<256xf32> to vector<1x256xf32>
    %cst_21 = arith.constant 1.600000e+01 : f32
    %37 = vector.broadcast %cst_21 : f32 to vector<1x256xf32>
    %38 = arith.divf %36, %37 : vector<1x256xf32>
    %39 = vector.broadcast %38 : vector<1x256xf32> to vector<16x256xf32>
    %40 = arith.subf %34, %39 : vector<16x256xf32>
    %41 = arith.mulf %40, %40 : vector<16x256xf32>
    %cst_22 = arith.constant dense<0.000000e+00> : vector<256xf32>
    %42 = vector.multi_reduction <add>, %41, %cst_22 [0] : vector<16x256xf32> to vector<256xf32>
    %43 = vector.shape_cast %42 : vector<256xf32> to vector<1x256xf32>
    %cst_23 = arith.constant 1.600000e+01 : f32
    %44 = vector.broadcast %cst_23 : f32 to vector<1x256xf32>
    %45 = arith.divf %43, %44 : vector<1x256xf32>
    %cst_24 = arith.constant 9.99999974E-6 : f32
    %46 = vector.broadcast %cst_24 : f32 to vector<1x256xf32>
    %47 = arith.addf %45, %46 : vector<1x256xf32>
    %48 = math.rsqrt %47 : vector<1x256xf32>
    %49 = arith.mulf %2, %48 : vector<1x256xf32>
    %50 = arith.mulf %38, %49 : vector<1x256xf32>
    %51 = arith.subf %3, %50 : vector<1x256xf32>
    %52 = vector.broadcast %49 : vector<1x256xf32> to vector<16x256xf32>
    %53 = arith.mulf %34, %52 : vector<16x256xf32>
    %54 = vector.broadcast %51 : vector<1x256xf32> to vector<16x256xf32>
    %55 = arith.addf %53, %54 : vector<16x256xf32>
    %cst_25 = arith.constant 0.000000e+00 : f32
    %56 = vector.broadcast %cst_25 : f32 to vector<16x256xf32>
    %57 = arith.maximumf %55, %56 : vector<16x256xf32>
    %c0_26 = arith.constant 0 : index
    %c0_27 = arith.constant 0 : index
    %58 = vector.load %arg3[%c0_26, %c0_27] : memref<256x512xf32, #tpu.memory_space<vmem>>, vector<256x512xf32>
    %cst_28 = arith.constant dense<0.000000e+00> : vector<16x512xf32>
    %59 = tpu.matmul %57, %58, %cst_28 {dimension_numbers = #tpu.dot_dimension_numbers<[1], [0], [0], [1], [0, 0, 1, 1], [], []>} : vector<16x256xf32>, vector<256x512xf32>, vector<16x512xf32> -> vector<16x512xf32>
    %cst_29 = arith.constant dense<0.000000e+00> : vector<512xf32>
    %60 = vector.multi_reduction <add>, %59, %cst_29 [0] : vector<16x512xf32> to vector<512xf32>
    %61 = vector.shape_cast %60 : vector<512xf32> to vector<1x512xf32>
    %cst_30 = arith.constant 1.600000e+01 : f32
    %62 = vector.broadcast %cst_30 : f32 to vector<1x512xf32>
    %63 = arith.divf %61, %62 : vector<1x512xf32>
    %64 = vector.broadcast %63 : vector<1x512xf32> to vector<16x512xf32>
    %65 = arith.subf %59, %64 : vector<16x512xf32>
    %66 = arith.mulf %65, %65 : vector<16x512xf32>
    %cst_31 = arith.constant dense<0.000000e+00> : vector<512xf32>
    %67 = vector.multi_reduction <add>, %66, %cst_31 [0] : vector<16x512xf32> to vector<512xf32>
    %68 = vector.shape_cast %67 : vector<512xf32> to vector<1x512xf32>
    %cst_32 = arith.constant 1.600000e+01 : f32
    %69 = vector.broadcast %cst_32 : f32 to vector<1x512xf32>
    %70 = arith.divf %68, %69 : vector<1x512xf32>
    %cst_33 = arith.constant 9.99999974E-6 : f32
    %71 = vector.broadcast %cst_33 : f32 to vector<1x512xf32>
    %72 = arith.addf %70, %71 : vector<1x512xf32>
    %73 = math.rsqrt %72 : vector<1x512xf32>
    %74 = arith.mulf %4, %73 : vector<1x512xf32>
    %75 = arith.mulf %63, %74 : vector<1x512xf32>
    %76 = arith.subf %5, %75 : vector<1x512xf32>
    %77 = vector.broadcast %74 : vector<1x512xf32> to vector<16x512xf32>
    %78 = arith.mulf %59, %77 : vector<16x512xf32>
    %79 = vector.broadcast %76 : vector<1x512xf32> to vector<16x512xf32>
    %80 = arith.addf %78, %79 : vector<16x512xf32>
    %cst_34 = arith.constant 0.000000e+00 : f32
    %81 = vector.broadcast %cst_34 : f32 to vector<16x512xf32>
    %82 = arith.maximumf %80, %81 : vector<16x512xf32>
    %c0_35 = arith.constant 0 : index
    %c0_36 = arith.constant 0 : index
    %83 = vector.load %arg4[%c0_35, %c0_36] : memref<512x128xf32, #tpu.memory_space<vmem>>, vector<512x128xf32>
    %cst_37 = arith.constant dense<0.000000e+00> : vector<16x128xf32>
    %84 = tpu.matmul %82, %83, %cst_37 {dimension_numbers = #tpu.dot_dimension_numbers<[1], [0], [0], [1], [0, 0, 1, 1], [], []>} : vector<16x512xf32>, vector<512x128xf32>, vector<16x128xf32> -> vector<16x128xf32>
    %85 = vector.broadcast %6 : vector<1x128xf32> to vector<16x128xf32>
    %86 = arith.addf %84, %85 : vector<16x128xf32>
    %c0_38 = arith.constant 0 : index
    %c0_39 = arith.constant 0 : index
    %87 = vector.load %arg6[%c0_38, %c0_39] : memref<16x128xf32, #tpu.memory_space<vmem>>, vector<16x128xf32>
    tpu.vector_store %arg6[%c0_38, %c0_39], %86 {strides = array<i32>} : memref<16x128xf32, #tpu.memory_space<vmem>>, vector<16x128xf32>,
    return
  }
}

</mosaic_0001>

<bundles_post_ra>
// kernel: tpu_custom_call.1
= control target key start
LH: loop header
LB: loop body
LE: loop exit
PB: predicated region body
PF: predicated region fallthrough
CT: control target
= control target key end

     0   :  { %11 = vsyncpa [#allocation3], 0  ;;  %s1971_s0 = inlined_call_operand.hbm [shape: f32[16,32], index: 0, kind: input, shape index: {}]   ;;  %s1972_s1 = inlined_call_operand.hbm [shape: f32[32,64], index: 1, kind: input, shape index: {}]   ;;  %s1973_s2 = inlined_call_operand.hbm [shape: f32[64,256], index: 2, kind: input, shape index: {}]   ;;  %s1974_s3 = inlined_call_operand.hbm [shape: f32[256,512], index: 3, kind: input, shape index: {}]   ;;  %s1975_s4 = inlined_call_operand.hbm [shape: f32[512,128], index: 4, kind: input, shape index: {}]   ;;  %s1976_s5 = inlined_call_operand.hbm [shape: f32[8,512], index: 5, kind: input, shape index: {}]   ;;  %s1977_s6 = inlined_call_operand.hbm [shape: f32[16,128], index: 6, kind: output, shape index: {}]  }
   0x1   :  { %12 = vsyncpa [#allocation6], 0 }
   0x2   :  { %13 = vsyncpa [#allocation9], 0 }
   0x3   :  { %14 = vsyncpa [#allocation12], 0 }
   0x4   :  { %15 = vsyncpa [#allocation4], 0  ;;  %s1699_s21 = smov [#allocation5]   ;;  %s1700_s23 = smov [#allocation8]  }
   0x5   :  { %s33_s22 = sshll.u32 %s1699_s21, 4  ;;  %s57_s24 = sshll.u32 %s1700_s23, 4  ;;  %s34_s22 = int_to_ptr.vmem [resolvable:$true] %s33_s22  ;;  %s1749_s24 = int_to_ptr.vmem [resolvable:$true] %s57_s24 }
   0x6   :  { %s1535_s27 = scalar_lea.hbm %s1972_s1, 512 }
   0x7   :  { %p1536_p0 = scmp.ne.s32.totalorder %s1972_s1, %s1535_s27  ;;  %p1539_p1 = scmp.lt.u32.totalorder %s1535_s27, %s1972_s1 }
   0x9   :  { %p1541_p2 = pnand %p1539_p1, %p1536_p0 }
   0xb   :  { %1544 = shalt.err (!%p1541_p2)
}
   0xc   :  { %s1545_s8 = scalar_lea.vmem %s34_s22, 512  ;;  %p1550_p4 = scmp.lt.s32.totalorder %s34_s22, %s34_s22 }
   0xd   :  { %p1546_p3 = scmp.ne.s32.totalorder %s34_s22, %s1545_s8  ;;  %p1551_p5 = scmp.lt.s32.totalorder %s1545_s8, %s1545_s8 }
   0xf   :  { %p1552_p6 = por %p1551_p5, %p1550_p4 }
  0x11   :  { %p1553_p7 = pnand %p1552_p6, %p1546_p3 }
  0x13   :  { %1556 = shalt.err (!%p1553_p7)
}
  0x14   :  { %s1701_s9 = smov 128   ;;  %s1702_s10 = smov 8  }
  0x15   :  { %39 = dma.hbm_to_vmem [thread:$0]  %s1972_s1, 512, %s34_s22, [#allocation6], %s1701_s9, %s1701_s9, %s1702_s10  }
  0x16   :  { %s1557_s15 = scalar_lea.hbm %s1974_s3, 16384 }
  0x17   :  { %p1558_p8 = scmp.ne.s32.totalorder %s1974_s3, %s1557_s15  ;;  %p1561_p9 = scmp.lt.u32.totalorder %s1557_s15, %s1974_s3 }
  0x19   :  { %p1563_p10 = pnand %p1561_p9, %p1558_p8 }
  0x1b   :  { %1566 = shalt.err (!%p1563_p10)
}
  0x1c   :  { %s1567_s20 = scalar_lea.vmem %s1749_s24, 16384  ;;  %p1572_p12 = scmp.lt.s32.totalorder %s1749_s24, %s1749_s24 }
  0x1d   :  { %p1568_p11 = scmp.ne.s32.totalorder %s1749_s24, %s1567_s20  ;;  %p1573_p13 = scmp.lt.s32.totalorder %s1567_s20, %s1567_s20 }
  0x1f   :  { %p1574_p0 = por %p1573_p13, %p1572_p12 }
  0x21   :  { %p1575_p1 = pnand %p1574_p0, %p1568_p11 }
  0x23   :  { %1578 = shalt.err (!%p1575_p1)
}
  0x24   :  { %s1703_s1 = smov 512   ;;  %s1704_s21 = smov 32  }
  0x25   :  { %63 = dma.hbm_to_vmem [thread:$0]  %s1974_s3, 16384, %s1749_s24, [#allocation9], %s1703_s1, %s1703_s1, %s1704_s21  }
  0x26   :  { %s1705_s25 = smov [#allocation2]   ;;  %s1706_s27 = smov [#allocation7]  }
  0x27   :  { %s21_s26 = sshll.u32 %s1705_s25, 4  ;;  %s45_s28 = sshll.u32 %s1706_s27, 4  ;;  %s22_s26 = int_to_ptr.vmem [resolvable:$true] %s21_s26  ;;  %s1783_s28 = int_to_ptr.vmem [resolvable:$true] %s45_s28 }
  0x28   :  { %s1579_s7 = scalar_lea.hbm %s1971_s0, 256 }
  0x29   :  { %p1580_p2 = scmp.ne.s32.totalorder %s1971_s0, %s1579_s7  ;;  %p1583_p3 = scmp.lt.u32.totalorder %s1579_s7, %s1971_s0 }
  0x2b   :  { %p1585_p4 = pnand %p1583_p3, %p1580_p2 }
  0x2d   :  { %1588 = shalt.err (!%p1585_p4)
}
  0x2e   :  { %s1589_s3 = scalar_lea.vmem %s22_s26, 256  ;;  %p1594_p6 = scmp.lt.s32.totalorder %s22_s26, %s22_s26 }
  0x2f   :  { %p1590_p5 = scmp.ne.s32.totalorder %s22_s26, %s1589_s3  ;;  %p1595_p7 = scmp.lt.s32.totalorder %s1589_s3, %s1589_s3 }
  0x31   :  { %p1596_p8 = por %p1595_p7, %p1594_p6 }
  0x33   :  { %p1597_p9 = pnand %p1596_p8, %p1590_p5 }
  0x35   :  { %1600 = shalt.err (!%p1597_p9)
}
  0x36   :  { %27 = dma.hbm_to_vmem [thread:$0]  %s1971_s0, 256, %s22_s26, [#allocation3], %s1701_s9, %s1701_s9, %s1702_s10  }
  0x37   :  { %s1601_s17 = scalar_lea.hbm %s1973_s2, 2048 }
  0x38   :  { %p1602_p10 = scmp.ne.s32.totalorder %s1973_s2, %s1601_s17  ;;  %p1605_p11 = scmp.lt.u32.totalorder %s1601_s17, %s1973_s2 }
  0x3a   :  { %p1607_p12 = pnand %p1605_p11, %p1602_p10 }
  0x3c   :  { %1610 = shalt.err (!%p1607_p12)
}
  0x3d   :  { %s1611_s21 = scalar_lea.vmem %s1783_s28, 2048  ;;  %p1616_p0 = scmp.lt.s32.totalorder %s1783_s28, %s1783_s28 }
  0x3e   :  { %p1612_p13 = scmp.ne.s32.totalorder %s1783_s28, %s1611_s21  ;;  %p1617_p1 = scmp.lt.s32.totalorder %s1611_s21, %s1611_s21 }
  0x40   :  { %p1618_p2 = por %p1617_p1, %p1616_p0 }
  0x42   :  { %p1619_p3 = pnand %p1618_p2, %p1612_p13 }
  0x44   :  { %1622 = shalt.err (!%p1619_p3)
}
  0x45   :  { %s1707_s0 = smov 256   ;;  %s1708_s22 = smov 16  }
  0x46   :  { %51 = dma.hbm_to_vmem [thread:$0]  %s1973_s2, 2048, %s1783_s28, [#allocation6], %s1707_s0, %s1707_s0, %s1708_s22  }
  0x47   :  { %s1709_s26 = smov [#allocation10]   ;;  %s1710_s29 = smov [#allocation11]  }
  0x48   :  { %s69_s27 = sshll.u32 %s1709_s26, 4  ;;  %s82_s30 = sshll.u32 %s1710_s29, 4  ;;  %s70_s27 = int_to_ptr.vmem [resolvable:$true] %s69_s27  ;;  %s83_s30 = int_to_ptr.vmem [resolvable:$true] %s82_s30 }
  0x49   :  { %s1623_s11 = scalar_lea.hbm %s1975_s4, 8192 }
  0x4a   :  { %p1624_p4 = scmp.ne.s32.totalorder %s1975_s4, %s1623_s11  ;;  %p1627_p5 = scmp.lt.u32.totalorder %s1623_s11, %s1975_s4 }
  0x4c   :  { %p1629_p6 = pnand %p1627_p5, %p1624_p4 }
  0x4e   :  { %1632 = shalt.err (!%p1629_p6)
}
  0x4f   :  { %s1633_s2 = scalar_lea.vmem %s70_s27, 8192  ;;  %p1638_p8 = scmp.lt.s32.totalorder %s70_s27, %s70_s27 }
  0x50   :  { %p1634_p7 = scmp.ne.s32.totalorder %s70_s27, %s1633_s2  ;;  %p1639_p9 = scmp.lt.s32.totalorder %s1633_s2, %s1633_s2 }
  0x52   :  { %p1640_p10 = por %p1639_p9, %p1638_p8 }
  0x54   :  { %p1641_p11 = pnand %p1640_p10, %p1634_p7 }
  0x56   :  { %1644 = shalt.err (!%p1641_p11)
}
  0x57   :  { %75 = dma.hbm_to_vmem [thread:$0]  %s1975_s4, 8192, %s70_s27, [#allocation9], %s1701_s9, %s1701_s9, %s1702_s10  }
  0x58   :  { %s1645_s17 = scalar_lea.hbm %s1976_s5, 512 }
  0x59   :  { %p1646_p12 = scmp.ne.s32.totalorder %s1976_s5, %s1645_s17  ;;  %p1649_p13 = scmp.lt.u32.totalorder %s1645_s17, %s1976_s5 }
  0x5b   :  { %p1651_p0 = pnand %p1649_p13, %p1646_p12 }
  0x5d   :  { %1654 = shalt.err (!%p1651_p0)
}
  0x5e   :  { %s1655_s21 = scalar_lea.vmem %s83_s30, 512  ;;  %p1660_p2 = scmp.lt.s32.totalorder %s83_s30, %s83_s30 }
  0x5f   :  { %p1656_p1 = scmp.ne.s32.totalorder %s83_s30, %s1655_s21  ;;  %p1661_p3 = scmp.lt.s32.totalorder %s1655_s21, %s1655_s21 }
  0x61   :  { %p1662_p4 = por %p1661_p3, %p1660_p2 }
  0x63   :  { %p1663_p5 = pnand %p1662_p4, %p1656_p1 }
  0x65   :  { %1666 = shalt.err (!%p1663_p5)
}
  0x66   :  { %85 = dma.hbm_to_vmem [thread:$0]  %s1976_s5, 512, %s83_s30, [#allocation12]  }
  0x67   :  { %1689 = dma.done.wait [#allocation3], 256  }
  0x68   :  { %1690 = vsyncadd [#allocation3], 4294967040 }
  0x69   :  { %1691 = dma.done.wait [#allocation6], 2560  }
  0x6a   :  { %1692 = vsyncadd [#allocation6], 4294964736 }
  0x6b   :  { %1693 = dma.done.wait [#allocation9], 24576  }
  0x6c   :  { %1694 = vsyncadd [#allocation9], 4294942720 }
  0x6d   :  { %1695 = dma.done.wait [#allocation12], 512  }
  0x6e   :  { %1696 = vsyncadd [#allocation12], 4294966784  ;;  %vm121_vm0 = vcmask 261120   ;;  %v117_v0 = vld [vmem:[#allocation5] sm:$0xff]  ;;  %v118_v1 = vld [vmem:[#allocation5 + $0x8] sm:$0xff]  ;;  %v1711_v32 = vmov 0.0  }
  0x6f   :  { %v119_v2 = vld [vmem:[#allocation5 + $0x10] sm:$0xff]  ;;  %v1290_v3 = vpack.c.bf16 %v118_v1, %v117_v0  ;;  %v120_v4 = vld [vmem:[#allocation5 + $0x18] sm:$0xff]  ;;  %v241_v8 = vld [vmem:[#allocation7 + $0x8] sm:$0xff]  ;;  %326 = vmatprep.mubr.f32.mxu1 %v1711_v32  ;;  %vm203_vm1 = vcmask 523264   ;;  %s1713_s5 = smov [#allocation13]  }
  0x70   :  { %v115_v5 = vld [vmem:[#allocation2] sm:$0xff]  ;;  %v1294_v6 = vpack.c.bf16 %v120_v4, %v119_v2  ;;  %v116_v7 = vld [vmem:[#allocation2 + $0x8] sm:$0xff]  ;;  %v240_v11 = vld [vmem:[#allocation7] sm:$0xff]  ;;  %s1178_s22 = sshll.u32 %s1713_s5, 4  ;;  %s1179_s22 = int_to_ptr.vmem [resolvable:$true] %s1178_s22 }
  0x71   :  { %1287 = vmatprep.mubr.msk.f32.mxu0 %vm121_vm0, %v115_v5  ;;  %1291 = vmatprep.subr.bf16.mxu0 %v1290_v3  ;;  %v243_v9 = vld [vmem:[#allocation7 + $0x18] sm:$0xff]  ;;  %v242_v12 = vld [vmem:[#allocation7 + $0x10] sm:$0xff]  ;;  %v245_v14 = vld [vmem:[#allocation7 + $0x28] sm:$0xff]  ;;  %s1667_s23 = scalar_lea.vmem %s1179_s22, 256  ;;  %p1672_p7 = scmp.lt.s32.totalorder %s1179_s22, %s1179_s22 }
  0x72   :  { %1293 = vmatpush3.bf16.msra.mxu0 %v1290_v3  ;;  %v1298_v10 = vpack.c.bf16 %v243_v9, %v241_v8  ;;  %v1300_v13 = vpack.c.bf16 %v242_v12, %v240_v11  ;;  %v247_v15 = vld [vmem:[#allocation7 + $0x38] sm:$0xff]  ;;  %v244_v17 = vld [vmem:[#allocation7 + $0x20] sm:$0xff]  ;;  %v246_v18 = vld [vmem:[#allocation7 + $0x30] sm:$0xff]  ;;  %p1668_p6 = scmp.ne.s32.totalorder %s1179_s22, %s1667_s23  ;;  %p1673_p8 = scmp.lt.s32.totalorder %s1667_s23, %s1667_s23 }
  0x73   :  { %1295 = vmatprep.subr.bf16.mxu0 %v1294_v6  ;;  %v1302_v16 = vpack.c.bf16 %v247_v15, %v245_v14  ;;  %v1304_v19 = vpack.c.bf16 %v246_v18, %v244_v17  ;;  %v249_v20 = vld [vmem:[#allocation7 + $0x48] sm:$0xff]  ;;  %v251_v21 = vld [vmem:[#allocation7 + $0x58] sm:$0xff]  ;;  %v248_v23 = vld [vmem:[#allocation7 + $0x40] sm:$0xff] }
  0x74   :  { %1299 = vmatprep.subr.bf16.mxu1 %v1298_v10  ;;  %v1306_v22 = vpack.c.bf16 %v251_v21, %v249_v20  ;;  %v250_v24 = vld [vmem:[#allocation7 + $0x50] sm:$0xff]  ;;  %v253_v26 = vld [vmem:[#allocation7 + $0x68] sm:$0xff]  ;;  %v255_v27 = vld [vmem:[#allocation7 + $0x78] sm:$0xff]  ;;  %p1674_p9 = por %p1673_p8, %p1672_p7 }
  0x75   :  { %1301 = vmatpush1.bf16.msra.mxu1 %v1300_v13  ;;  %v1308_v25 = vpack.c.bf16 %v250_v24, %v248_v23  ;;  %v1310_v28 = vpack.c.bf16 %v255_v27, %v253_v26  ;;  %v252_v29 = vld [vmem:[#allocation7 + $0x60] sm:$0xff]  ;;  %v254_v30 = vld [vmem:[#allocation7 + $0x70] sm:$0xff]  ;;  %v458_v8 = vld [vmem:[#allocation8 + $0x8] sm:$0xff] }
  0x76   :  { %1297 = vmatpush3.bf16.msra.mxu0 %v1294_v6  ;;  %1303 = vmatprep.subr.bf16.mxu1 %v1302_v16  ;;  %v1312_v31 = vpack.c.bf16 %v254_v30, %v252_v29  ;;  %v104_v60 = vld [vmem:[#allocation11] ss:$0 sm:$0xff]  ;;  %v105_v63 = vld [vmem:[#allocation11 + $0x1] ss:$0 sm:$0xff]  ;;  %v462_v9 = vld [vmem:[#allocation8 + $0x28] sm:$0xff]  ;;  %p1675_p10 = pnand %p1674_p9, %p1668_p6 }
  0x77   :  { %v460_v10 = vld [vmem:[#allocation8 + $0x18] sm:$0xff]  ;;  %v1314_v11 = vpack.c.bf16 %v462_v9, %v458_v8  ;;  %v457_v13 = vld [vmem:[#allocation8] sm:$0xff]  ;;  %v459_v17 = vld [vmem:[#allocation8 + $0x10] sm:$0xff] }
  0x78   :  { %v464_v12 = vld [vmem:[#allocation8 + $0x38] sm:$0xff]  ;;  %v461_v14 = vld [vmem:[#allocation8 + $0x20] sm:$0xff]  ;;  %v463_v18 = vld [vmem:[#allocation8 + $0x30] sm:$0xff] }
  0x79   :  { %1288 = vmatmul.mubr.msk.f32.vlgmr.msra.gmra.mrb[0].mxu0 %vm121_vm0, %v116_v7  ;;  %1305 = vmatpush1.bf16.msra.mxu1 %v1304_v19  ;;  %v1378_v15 = vpack.c.bf16 %v464_v12, %v460_v10  ;;  %v1316_v16 = vpack.c.bf16 %v461_v14, %v457_v13  ;;  %v1380_v19 = vpack.c.bf16 %v463_v18, %v459_v17  ;;  %v466_v20 = vld [vmem:[#allocation8 + $0x48] sm:$0xff]  ;;  %v472_v24 = vld [vmem:[#allocation8 + $0x78] sm:$0xff]  ;;  %v469_v26 = vld [vmem:[#allocation8 + $0x60] sm:$0xff] }
  0x7a   :  { %1307 = vmatprep.subr.bf16.mxu1 %v1306_v22  ;;  %1315 = vmatprep.subr.bf16.mxu0 %v1314_v11  ;;  %v470_v21 = vld [vmem:[#allocation8 + $0x68] sm:$0xff]  ;;  %v468_v22 = vld [vmem:[#allocation8 + $0x58] sm:$0xff]  ;;  %v467_v29 = vld [vmem:[#allocation8 + $0x50] sm:$0xff] }
  0x7b   :  { %1317 = vmatpush1.bf16.msra.mxu0 %v1316_v16  ;;  %v1318_v23 = vpack.c.bf16 %v470_v21, %v466_v20  ;;  %v1382_v27 = vpack.c.bf16 %v472_v24, %v468_v22  ;;  %v471_v30 = vld [vmem:[#allocation8 + $0x70] sm:$0xff]  ;;  %v504_v8 = vld [vmem:[#allocation8 + $0x178] sm:$0xff]  ;;  %v497_v9 = vld [vmem:[#allocation8 + $0x140] sm:$0xff] }
  0x7c   :  { %v501_v10 = vld [vmem:[#allocation8 + $0x160] sm:$0xff]  ;;  %v499_v13 = vld [vmem:[#allocation8 + $0x150] sm:$0xff]  ;;  %v506_v16 = vld [vmem:[#allocation8 + $0x188] sm:$0xff] }
  0x7d   :  { %1309 = vmatpush1.bf16.msra.mxu1 %v1308_v25  ;;  %v465_v25 = vld [vmem:[#allocation8 + $0x40] sm:$0xff]  ;;  %1319 = vmatprep.subr.bf16.mxu0 %v1318_v23  ;;  %v1336_v12 = vpack.c.bf16 %v501_v10, %v497_v9  ;;  %v503_v14 = vld [vmem:[#allocation8 + $0x170] sm:$0xff]  ;;  %v510_v17 = vld [vmem:[#allocation8 + $0x1a8] sm:$0xff] }
  0x7e   :  { %1311 = vmatprep.subr.bf16.mxu1 %v1310_v28  ;;  %v1320_v28 = vpack.c.bf16 %v469_v26, %v465_v25  ;;  %v508_v18 = vld [vmem:[#allocation8 + $0x198] sm:$0xff]  ;;  %v505_v21 = vld [vmem:[#allocation8 + $0x180] sm:$0xff]  ;;  %v507_v25 = vld [vmem:[#allocation8 + $0x190] sm:$0xff] }
  0x7f   :  { %v512_v20 = vld [vmem:[#allocation8 + $0x1b8] sm:$0xff]  ;;  %v509_v22 = vld [vmem:[#allocation8 + $0x1a0] sm:$0xff]  ;;  %v511_v26 = vld [vmem:[#allocation8 + $0x1b0] sm:$0xff] }
  0x80   :  { %1321 = vmatpush1.bf16.msra.mxu0 %v1320_v28  ;;  %v1402_v23 = vpack.c.bf16 %v512_v20, %v508_v18  ;;  %v1340_v24 = vpack.c.bf16 %v509_v22, %v505_v21  ;;  %v514_v28 = vld [vmem:[#allocation8 + $0x1c8] sm:$0xff]  ;;  %v539_v9 = vld [vmem:[#allocation8 + $0x290] sm:$0xff]  ;;  %v549_v18 = vld [vmem:[#allocation8 + $0x2e0] sm:$0xff] }
  0x81   :  { %1313 = vmatpush1.bf16.msra.mxu1 %v1312_v31  ;;  %v1384_v31 = vpack.c.bf16 %v471_v30, %v467_v29  ;;  %v518_v29 = vld [vmem:[#allocation8 + $0x1e8] sm:$0xff]  ;;  %v543_v10 = vld [vmem:[#allocation8 + $0x2b0] sm:$0xff] }
  0x82   :  { %1379 = vmatprep.subr.bf16.mxu1 %v1378_v15  ;;  %v1400_v15 = vpack.c.bf16 %v503_v14, %v499_v13  ;;  %v1342_v30 = vpack.c.bf16 %v518_v29, %v514_v28  ;;  %v550_v13 = vld [vmem:[#allocation8 + $0x2e8] sm:$0xff]  ;;  %v548_v14 = vld [vmem:[#allocation8 + $0x2d8] sm:$0xff]  ;;  %v547_v21 = vld [vmem:[#allocation8 + $0x2d0] sm:$0xff] }
  0x83   :  { %v551_v22 = vld [vmem:[#allocation8 + $0x2f0] sm:$0xff]  ;;  %v560_v28 = vld [vmem:[#allocation8 + $0x338] sm:$0xff]  ;;  %v553_v29 = vld [vmem:[#allocation8 + $0x300] sm:$0xff] }
 0x14c   :  { %v1289_v33 = vpop.f32.mrb[0].mxu0 }
 0x14d   :  { %v205_v34 = vsel %vm203_vm1, %v1289_v33, 0.0  ;;  %v194_v35 = vpop.f32.mrb[1].mxu0 }
 0x14e   :  { %v204_v36 = vsel %vm203_vm1, %v194_v35, 0.0 }
 0x14f   :  { %v206_v37 = vadd.f32 %v205_v34, %v204_v36  ;;  %v476_v34 = vld [vmem:[#allocation8 + $0x98] sm:$0xff] }
 0x150   :  { %v480_v36 = vld [vmem:[#allocation8 + $0xb8] sm:$0xff] }
 0x151   :  { %v207_v38 = vrot.slane %v206_v37, 4 }
 0x153   :  { %v208_v39 = vadd.f32 %v207_v38, %v206_v37  ;;  %v473_v37 = vld [vmem:[#allocation8 + $0x80] sm:$0xff] }
 0x154   :  { %v477_v38 = vld [vmem:[#allocation8 + $0xa0] sm:$0xff] }
 0x155   :  { %v209_v40 = vrot.slane %v208_v39, 2 }
 0x157   :  { %v210_v41 = vadd.f32 %v209_v40, %v208_v39  ;;  %v1386_v39 = vpack.c.bf16 %v480_v36, %v476_v34  ;;  %v1324_v40 = vpack.c.bf16 %v477_v38, %v473_v37  ;;  %v515_v36 = vld [vmem:[#allocation8 + $0x1d0] sm:$0xff] }
 0x158   :  { %v519_v37 = vld [vmem:[#allocation8 + $0x1f0] sm:$0xff] }
 0x159   :  { %v211_v42 = vrot.slane %v210_v41, 1 }
 0x15b   :  { %v212_v43 = vadd.f32 %v211_v42, %v210_v41  ;;  %v475_v41 = vld [vmem:[#allocation8 + $0x90] sm:$0xff] }
 0x15c   :  { %v479_v42 = vld [vmem:[#allocation8 + $0xb0] sm:$0xff] }
 0x15d   :  { %v214_v44 = vmul.f32 0.0625, %v212_v43  ;;  %v1388_v43 = vpack.c.bf16 %v479_v42, %v475_v41  ;;  %v526_v41 = vld [vmem:[#allocation8 + $0x228] sm:$0xff]  ;;  %v524_v42 = vld [vmem:[#allocation8 + $0x218] sm:$0xff] }
 0x15f   :  { %v215_v45 = vsub.f32 %v194_v35, %v214_v44  ;;  %v216_v46 = vsub.f32 %v1289_v33, %v214_v44 }
 0x161   :  { %v217_v47 = vmul.f32 %v215_v45, %v215_v45  ;;  %v218_v48 = vmul.f32 %v216_v46, %v216_v46  ;;  %v486_v45 = vld [vmem:[#allocation8 + $0xe8] sm:$0xff]  ;;  %v484_v46 = vld [vmem:[#allocation8 + $0xd8] sm:$0xff] }
 0x163   :  { %v219_v49 = vsel %vm203_vm1, %v217_v47, 0.0  ;;  %v220_v50 = vsel %vm203_vm1, %v218_v48, 0.0  ;;  %v488_v48 = vld [vmem:[#allocation8 + $0xf8] sm:$0xff] }
 0x164   :  { %v221_v51 = vadd.f32 %v220_v50, %v219_v49  ;;  %v481_v49 = vld [vmem:[#allocation8 + $0xc0] sm:$0xff] }
 0x165   :  { %v485_v50 = vld [vmem:[#allocation8 + $0xe0] sm:$0xff] }
 0x166   :  { %v222_v52 = vrot.slane %v221_v51, 4 }
 0x168   :  { %v223_v53 = vadd.f32 %v222_v52, %v221_v51  ;;  %v1390_v51 = vpack.c.bf16 %v488_v48, %v484_v46  ;;  %v1328_v52 = vpack.c.bf16 %v485_v50, %v481_v49  ;;  %v525_v46 = vld [vmem:[#allocation8 + $0x220] sm:$0xff]  ;;  %v523_v49 = vld [vmem:[#allocation8 + $0x210] sm:$0xff] }
 0x169   :  { %v527_v50 = vld [vmem:[#allocation8 + $0x230] sm:$0xff] }
 0x16a   :  { %v224_v54 = vrot.slane %v223_v53, 2 }
 0x16c   :  { %v225_v55 = vadd.f32 %v224_v54, %v223_v53  ;;  %v483_v53 = vld [vmem:[#allocation8 + $0xd0] sm:$0xff] }
 0x16d   :  { %v487_v54 = vld [vmem:[#allocation8 + $0xf0] sm:$0xff] }
 0x16e   :  { %v226_v56 = vrot.slane %v225_v55, 1 }
 0x170   :  { %v227_v57 = vadd.f32 %v226_v56, %v225_v55  ;;  %v1392_v55 = vpack.c.bf16 %v487_v54, %v483_v53  ;;  %v490_v56 = vld [vmem:[#allocation8 + $0x108] sm:$0xff]  ;;  %v532_v54 = vld [vmem:[#allocation8 + $0x258] sm:$0xff] }
 0x171   :  { %v534_v53 = vld [vmem:[#allocation8 + $0x268] sm:$0xff] }
 0x172   :  { %v228_v58 = vmul.f32 0.0625, %v227_v57  ;;  %v494_v57 = vld [vmem:[#allocation8 + $0x128] sm:$0xff] }
 0x174   :  { %v229_v59 = vadd.f32 1e-05, %v228_v58  ;;  %v492_v58 = vld [vmem:[#allocation8 + $0x118] sm:$0xff] }
 0x176   :  { %1521 = vrsqrt.f32 %v229_v59  ;;  %v1330_v59 = vpack.c.bf16 %v494_v57, %v490_v56  ;;  %v536_v56 = vld [vmem:[#allocation8 + $0x278] sm:$0xff]  ;;  %v529_v57 = vld [vmem:[#allocation8 + $0x240] sm:$0xff] }
 0x180   :  { %v1522_v61 = vpop.eup %1521 }
 0x181   :  { %v231_v62 = vmul.f32 %v1522_v61, %v104_v60  ;;  %v496_v60 = vld [vmem:[#allocation8 + $0x138] sm:$0xff]  ;;  %v489_v61 = vld [vmem:[#allocation8 + $0x100] sm:$0xff] }
 0x183   :  { %v232_v0 = vmul.f32 %v231_v62, %v214_v44  ;;  %v234_v1 = vmul.f32 %v231_v62, %v194_v35  ;;  %v235_v2 = vmul.f32 %v1289_v33, %v231_v62  ;;  %v478_v33 = vld [vmem:[#allocation8 + $0xa8] sm:$0xff]  ;;  %v493_v62 = vld [vmem:[#allocation8 + $0x120] sm:$0xff] }
 0x184   :  { %v482_v44 = vld [vmem:[#allocation8 + $0xc8] sm:$0xff] }
 0x185   :  { %v233_v3 = vsub.f32 %v105_v63, %v232_v0  ;;  %v1326_v47 = vpack.c.bf16 %v486_v45, %v482_v44  ;;  %v1394_v63 = vpack.c.bf16 %v496_v60, %v492_v58  ;;  %v1332_v0 = vpack.c.bf16 %v493_v62, %v489_v61  ;;  %v528_v44 = vld [vmem:[#allocation8 + $0x238] sm:$0xff]  ;;  %v521_v45 = vld [vmem:[#allocation8 + $0x200] sm:$0xff]  ;;  %v531_v61 = vld [vmem:[#allocation8 + $0x250] sm:$0xff] }
 0x186   :  { %v1348_v48 = vpack.c.bf16 %v525_v46, %v521_v45  ;;  %v533_v58 = vld [vmem:[#allocation8 + $0x260] sm:$0xff]  ;;  %v535_v62 = vld [vmem:[#allocation8 + $0x270] sm:$0xff] }
 0x187   :  { %v236_v4 = vadd.f32 %v234_v1, %v233_v3  ;;  %v237_v5 = vadd.f32 %v235_v2, %v233_v3  ;;  %v491_v1 = vld [vmem:[#allocation8 + $0x110] sm:$0xff]  ;;  %v1352_v60 = vpack.c.bf16 %v533_v58, %v529_v57  ;;  %v578_v58 = vld [vmem:[#allocation8 + $0x3c8] sm:$0xff] }
 0x188   :  { %v495_v2 = vld [vmem:[#allocation8 + $0x130] sm:$0xff] }
 0x189   :  { %v238_v6 = vmax.f32 %v236_v4, 0.0  ;;  %v239_v7 = vmax.f32 %v237_v5, 0.0  ;;  %v1396_v3 = vpack.c.bf16 %v495_v2, %v491_v1  ;;  %v498_v4 = vld [vmem:[#allocation8 + $0x148] sm:$0xff]  ;;  %v540_v2 = vld [vmem:[#allocation8 + $0x298] sm:$0xff]  ;;  %v567_v46 = vld [vmem:[#allocation8 + $0x370] sm:$0xff] }
 0x18a   :  { %v502_v5 = vld [vmem:[#allocation8 + $0x168] sm:$0xff]  ;;  %v575_v57 = vld [vmem:[#allocation8 + $0x3b0] sm:$0xff] }
 0x18b   :  { %1195 = vmatmul.mubr.msk.f32.vlgmr.msra.gmra.mrb[0].mxu1 %vm203_vm1, %v238_v6  ;;  %v500_v6 = vld [vmem:[#allocation8 + $0x158] sm:$0xff]  ;;  %v542_v1 = vld [vmem:[#allocation8 + $0x2a8] sm:$0xff] }
 0x18c   :  { %332 = vmatprep.mubr.f32.mxu1 %v1711_v32  ;;  %1381 = vmatpush1.bf16.msra.mxu1 %v1380_v19  ;;  %v474_v32 = vld [vmem:[#allocation8 + $0x88] sm:$0xff]  ;;  %v1398_v11 = vpack.c.bf16 %v504_v8, %v500_v6  ;;  %v1338_v19 = vpack.c.bf16 %v510_v17, %v506_v16  ;;  %v541_v6 = vld [vmem:[#allocation8 + $0x2a0] sm:$0xff]  ;;  %v552_v16 = vld [vmem:[#allocation8 + $0x2f8] sm:$0xff] }
 0x18d   :  { %1383 = vmatprep.subr.bf16.mxu1 %v1382_v27  ;;  %v1322_v35 = vpack.c.bf16 %v478_v33, %v474_v32  ;;  %v1404_v27 = vpack.c.bf16 %v511_v26, %v507_v25  ;;  %v520_v32 = vld [vmem:[#allocation8 + $0x1f8] sm:$0xff]  ;;  %v513_v33 = vld [vmem:[#allocation8 + $0x1c0] sm:$0xff]  ;;  %v558_v25 = vld [vmem:[#allocation8 + $0x328] sm:$0xff] }
 0x18e   :  { %v545_v17 = vld [vmem:[#allocation8 + $0x2c0] sm:$0xff]  ;;  %v556_v26 = vld [vmem:[#allocation8 + $0x318] sm:$0xff] }
 0x18f   :  { %1196 = vmatmul.mubr.msk.f32.gmra.mrb[2].mxu1 %vm203_vm1, %v239_v7  ;;  %1323 = vmatprep.subr.bf16.mxu0 %v1322_v35  ;;  %v1334_v7 = vpack.c.bf16 %v502_v5, %v498_v4  ;;  %v517_v35 = vld [vmem:[#allocation8 + $0x1e0] sm:$0xff]  ;;  %v544_v4 = vld [vmem:[#allocation8 + $0x2b8] sm:$0xff]  ;;  %v1360_v20 = vpack.c.bf16 %v549_v18, %v545_v17 }
 0x190   :  { %1385 = vmatpush1.bf16.msra.mxu1 %v1384_v31  ;;  %1325 = vmatpush1.bf16.msra.mxu0 %v1324_v40  ;;  %v516_v31 = vld [vmem:[#allocation8 + $0x1d8] sm:$0xff]  ;;  %v1344_v38 = vpack.c.bf16 %v517_v35, %v513_v33  ;;  %v522_v40 = vld [vmem:[#allocation8 + $0x208] sm:$0xff]  ;;  %v537_v5 = vld [vmem:[#allocation8 + $0x280] sm:$0xff] }
 0x191   :  { %1387 = vmatprep.subr.bf16.mxu1 %v1386_v39  ;;  %1327 = vmatprep.subr.bf16.mxu0 %v1326_v47  ;;  %v1406_v34 = vpack.c.bf16 %v520_v32, %v516_v31  ;;  %v1408_v39 = vpack.c.bf16 %v519_v37, %v515_v36  ;;  %v1410_v47 = vpack.c.bf16 %v528_v44, %v524_v42  ;;  %v555_v33 = vld [vmem:[#allocation8 + $0x310] sm:$0xff]  ;;  %v562_v35 = vld [vmem:[#allocation8 + $0x348] sm:$0xff]  ;;  %v561_v42 = vld [vmem:[#allocation8 + $0x340] sm:$0xff] }
 0x192   :  { %v1356_v8 = vpack.c.bf16 %v541_v6, %v537_v5  ;;  %v1426_v31 = vpack.c.bf16 %v560_v28, %v556_v26  ;;  %v566_v37 = vld [vmem:[#allocation8 + $0x368] sm:$0xff]  ;;  %v563_v44 = vld [vmem:[#allocation8 + $0x350] sm:$0xff] }
 0x193   :  { %v583_v5 = vld [vmem:[#allocation8 + $0x3f0] sm:$0xff] }
 0x194   :  { %1389 = vmatpush1.bf16.msra.mxu1 %v1388_v43  ;;  %1329 = vmatpush1.bf16.msra.mxu0 %v1328_v52  ;;  %v1346_v43 = vpack.c.bf16 %v526_v41, %v522_v40  ;;  %v530_v52 = vld [vmem:[#allocation8 + $0x248] sm:$0xff]  ;;  %v1366_v40 = vpack.c.bf16 %v566_v37, %v562_v35 }
 0x195   :  { %1391 = vmatprep.subr.bf16.mxu1 %v1390_v51  ;;  %1331 = vmatprep.subr.bf16.mxu0 %v1330_v59  ;;  %v1412_v51 = vpack.c.bf16 %v527_v50, %v523_v49  ;;  %v1414_v59 = vpack.c.bf16 %v536_v56, %v532_v54  ;;  %v1432_v49 = vpack.c.bf16 %v567_v46, %v563_v44  ;;  %v571_v56 = vld [vmem:[#allocation8 + $0x390] sm:$0xff] }
 0x198   :  { %1393 = vmatpush1.bf16.msra.mxu1 %v1392_v55  ;;  %1333 = vmatpush1.bf16.msra.mxu0 %v1332_v0  ;;  %v1350_v55 = vpack.c.bf16 %v534_v53, %v530_v52  ;;  %v538_v0 = vld [vmem:[#allocation8 + $0x288] sm:$0xff]  ;;  %v576_v52 = vld [vmem:[#allocation8 + $0x3b8] sm:$0xff]  ;;  %v569_v53 = vld [vmem:[#allocation8 + $0x380] sm:$0xff] }
 0x199   :  { %1395 = vmatprep.subr.bf16.mxu1 %v1394_v63  ;;  %1335 = vmatprep.subr.bf16.mxu0 %v1334_v7  ;;  %v1416_v63 = vpack.c.bf16 %v535_v62, %v531_v61  ;;  %v1418_v7 = vpack.c.bf16 %v544_v4, %v540_v2  ;;  %v1436_v62 = vpack.c.bf16 %v575_v57, %v571_v56  ;;  %v579_v4 = vld [vmem:[#allocation8 + $0x3d0] sm:$0xff]  ;;  %v389_v56 = vlaneseq }
 0x19c   :  { %1397 = vmatpush1.bf16.msra.mxu1 %v1396_v3  ;;  %1337 = vmatpush1.bf16.msra.mxu0 %v1336_v12  ;;  %v1354_v3 = vpack.c.bf16 %v542_v1, %v538_v0  ;;  %v546_v12 = vld [vmem:[#allocation8 + $0x2c8] sm:$0xff]  ;;  %v577_v0 = vld [vmem:[#allocation8 + $0x3c0] sm:$0xff] }
 0x19d   :  { %1399 = vmatprep.subr.bf16.mxu1 %v1398_v11  ;;  %1339 = vmatprep.subr.bf16.mxu0 %v1338_v19  ;;  %v1420_v11 = vpack.c.bf16 %v543_v10, %v539_v9  ;;  %v1422_v19 = vpack.c.bf16 %v552_v16, %v548_v14 }
 0x1a0   :  { %1401 = vmatpush1.bf16.msra.mxu1 %v1400_v15  ;;  %1341 = vmatpush1.bf16.msra.mxu0 %v1340_v24  ;;  %v1358_v15 = vpack.c.bf16 %v550_v13, %v546_v12  ;;  %v554_v24 = vld [vmem:[#allocation8 + $0x308] sm:$0xff] }
 0x1a1   :  { %1403 = vmatprep.subr.bf16.mxu1 %v1402_v23  ;;  %1343 = vmatprep.subr.bf16.mxu0 %v1342_v30  ;;  %v1424_v23 = vpack.c.bf16 %v551_v22, %v547_v21  ;;  %v557_v30 = vld [vmem:[#allocation8 + $0x320] sm:$0xff] }
 0x1a2   :  { %v1364_v32 = vpack.c.bf16 %v557_v30, %v553_v29 }
 0x1a4   :  { %1405 = vmatpush1.bf16.msra.mxu1 %v1404_v27  ;;  %1345 = vmatpush1.bf16.msra.mxu0 %v1344_v38  ;;  %v1362_v27 = vpack.c.bf16 %v558_v25, %v554_v24  ;;  %v564_v38 = vld [vmem:[#allocation8 + $0x358] sm:$0xff] }
 0x1a5   :  { %1407 = vmatprep.subr.bf16.mxu1 %v1406_v34  ;;  %1347 = vmatprep.subr.bf16.mxu0 %v1346_v43  ;;  %v559_v34 = vld [vmem:[#allocation8 + $0x330] sm:$0xff]  ;;  %v565_v43 = vld [vmem:[#allocation8 + $0x360] sm:$0xff] }
 0x1a6   :  { %v1428_v36 = vpack.c.bf16 %v559_v34, %v555_v33  ;;  %v1368_v45 = vpack.c.bf16 %v565_v43, %v561_v42 }
 0x1a8   :  { %1409 = vmatpush1.bf16.msra.mxu1 %v1408_v39  ;;  %1349 = vmatpush1.bf16.msra.mxu0 %v1348_v48  ;;  %v568_v39 = vld [vmem:[#allocation8 + $0x378] sm:$0xff]  ;;  %v574_v48 = vld [vmem:[#allocation8 + $0x3a8] sm:$0xff] }
 0x1a9   :  { %1411 = vmatprep.subr.bf16.mxu1 %v1410_v47  ;;  %1351 = vmatprep.subr.bf16.mxu0 %v1350_v55  ;;  %v1430_v41 = vpack.c.bf16 %v568_v39, %v564_v38  ;;  %v570_v47 = vld [vmem:[#allocation8 + $0x388] sm:$0xff]  ;;  %v573_v55 = vld [vmem:[#allocation8 + $0x3a0] sm:$0xff] }
 0x1aa   :  { %v1370_v50 = vpack.c.bf16 %v574_v48, %v570_v47  ;;  %v1372_v61 = vpack.c.bf16 %v573_v55, %v569_v53 }
 0x1ac   :  { %1413 = vmatpush1.bf16.msra.mxu1 %v1412_v51  ;;  %1353 = vmatpush1.bf16.msra.mxu0 %v1352_v60  ;;  %v572_v51 = vld [vmem:[#allocation8 + $0x398] sm:$0xff] }
 0x1ad   :  { %1415 = vmatprep.subr.bf16.mxu1 %v1414_v59  ;;  %1355 = vmatprep.subr.bf16.mxu0 %v1354_v3  ;;  %v1434_v54 = vpack.c.bf16 %v576_v52, %v572_v51  ;;  %v582_v59 = vld [vmem:[#allocation8 + $0x3e8] sm:$0xff]  ;;  %v580_v60 = vld [vmem:[#allocation8 + $0x3d8] sm:$0xff]  ;;  %v581_v3 = vld [vmem:[#allocation8 + $0x3e0] sm:$0xff] }
 0x1ae   :  { %v1374_v1 = vpack.c.bf16 %v582_v59, %v578_v58  ;;  %v1376_v6 = vpack.c.bf16 %v581_v3, %v577_v0  ;;  %v1862_v58 = vshrl.u32 %v389_v56, 7  ;;  %v107_v0 = vld [vmem:[#allocation11 + $0x2] ss:$8 sm:$0x3] }
 0x1af   :  { %v1010_v56 = vld [vmem:[#allocation10 + $0x1a8] sm:$0xff] }
 0x1b0   :  { %1417 = vmatpush1.bf16.msra.mxu1 %v1416_v63  ;;  %1357 = vmatpush1.bf16.msra.mxu0 %v1356_v8  ;;  %v584_v63 = vld [vmem:[#allocation8 + $0x3f8] sm:$0xff]  ;;  %v1873_v3 = vsub.s32 1, %v1862_v58 }
 0x1b1   :  { %1419 = vmatprep.subr.bf16.mxu1 %v1418_v7  ;;  %1359 = vmatprep.subr.bf16.mxu0 %v1358_v15  ;;  %v1438_v2 = vpack.c.bf16 %v584_v63, %v580_v60  ;;  %v1440_v7 = vpack.c.bf16 %v583_v5, %v579_v4 }
 0x1b4   :  { %1421 = vmatpush1.bf16.msra.mxu1 %v1420_v11  ;;  %1361 = vmatpush1.bf16.msra.mxu0 %v1360_v20 }
 0x1b5   :  { %1423 = vmatprep.subr.bf16.mxu1 %v1422_v19  ;;  %1363 = vmatprep.subr.bf16.mxu0 %v1362_v27 }
 0x1b8   :  { %1425 = vmatpush1.bf16.msra.mxu1 %v1424_v23  ;;  %1365 = vmatpush1.bf16.msra.mxu0 %v1364_v32 }
 0x1b9   :  { %1427 = vmatprep.subr.bf16.mxu1 %v1426_v31  ;;  %1367 = vmatprep.subr.bf16.mxu0 %v1366_v40 }
 0x1bc   :  { %1429 = vmatpush1.bf16.msra.mxu1 %v1428_v36  ;;  %1369 = vmatpush1.bf16.msra.mxu0 %v1368_v45 }
 0x1bd   :  { %1431 = vmatprep.subr.bf16.mxu1 %v1430_v41  ;;  %1371 = vmatprep.subr.bf16.mxu0 %v1370_v50 }
 0x1c0   :  { %1433 = vmatpush1.bf16.msra.mxu1 %v1432_v49  ;;  %1373 = vmatpush1.bf16.msra.mxu0 %v1372_v61 }
 0x1c1   :  { %1435 = vmatprep.subr.bf16.mxu1 %v1434_v54  ;;  %1375 = vmatprep.subr.bf16.mxu0 %v1374_v1  ;;  %v1712_v54 = vmov 1966171168  }
 0x1c2   :  { %v387_v55 = vunpack.c.l.s4 %v1712_v54  ;;  %v1009_v54 = vld [vmem:[#allocation10 + $0x1a0] sm:$0xff] }
 0x1c4   :  { %1437 = vmatpush1.bf16.msra.mxu1 %v1436_v62  ;;  %1377 = vmatpush1.bf16.msra.mxu0 %v1376_v6  ;;  %v388_v57 = vunpack.c.0.s8 %v387_v55 }
 0x1c5   :  { %1439 = vmatprep.subr.bf16.mxu1 %v1438_v2  ;;  %v1870_v2 = vsub.s32 0, %v1862_v58 }
 0x1c6   :  { %v1865_v60 = vsub.s32 %v388_v57, %v1862_v58  ;;  %v961_v57 = vld [vmem:[#allocation10 + $0x20] sm:$0xff] }
 0x1c8   :  { %1441 = vmatpush1.bf16.msra.mxu1 %v1440_v7 }
 0x25e   :  { %v1850_v8 = vpop.f32.mrb[0].mxu1 }
 0x25f   :  { %v1852_v9 = vpop.f32.mrb[1].mxu1 }
 0x262   :  { %v1854_v10 = vpop.f32.mrb[2].mxu1 }
 0x263   :  { %v339_v11 = vadd.f32 %v1854_v10, %v1850_v8  ;;  %v336_v12 = vpop.f32.mrb[3].mxu1 }
 0x264   :  { %v346_v13 = vadd.f32 %v336_v12, %v1852_v9 }
 0x265   :  { %v340_v14 = vrot.slane %v339_v11, 4 }
 0x266   :  { %v347_v15 = vrot.slane %v346_v13, 4 }
 0x267   :  { %v341_v16 = vadd.f32 %v340_v14, %v339_v11 }
 0x268   :  { %v348_v17 = vadd.f32 %v347_v15, %v346_v13 }
 0x269   :  { %v342_v18 = vrot.slane %v341_v16, 2 }
 0x26a   :  { %v349_v19 = vrot.slane %v348_v17, 2 }
 0x26b   :  { %v343_v20 = vadd.f32 %v342_v18, %v341_v16 }
 0x26c   :  { %v350_v21 = vadd.f32 %v349_v19, %v348_v17  ;;  %v109_v19 = vld [vmem:[#allocation11 + $0x3] ss:$8 sm:$0x3] }
 0x26d   :  { %v344_v22 = vrot.slane %v343_v20, 1 }
 0x26e   :  { %v351_v23 = vrot.slane %v350_v21, 1 }
 0x26f   :  { %v345_v24 = vadd.f32 %v344_v22, %v343_v20 }
 0x270   :  { %v352_v25 = vadd.f32 %v351_v23, %v350_v21 }
 0x271   :  { %v353_v26 = vmul.f32 0.0625, %v345_v24 }
 0x272   :  { %v354_v27 = vmul.f32 0.0625, %v352_v25 }
 0x273   :  { %v355_v28 = vsub.f32 %v1850_v8, %v353_v26  ;;  %v357_v29 = vsub.f32 %v1854_v10, %v353_v26 }
 0x274   :  { %v356_v30 = vsub.f32 %v1852_v9, %v354_v27  ;;  %v358_v31 = vsub.f32 %v336_v12, %v354_v27 }
 0x275   :  { %v359_v32 = vmul.f32 %v355_v28, %v355_v28  ;;  %v361_v33 = vmul.f32 %v357_v29, %v357_v29  ;;  %v973_v28 = vld [vmem:[#allocation10 + $0x80] sm:$0xff]  ;;  %v974_v29 = vld [vmem:[#allocation10 + $0x88] sm:$0xff] }
 0x276   :  { %v360_v34 = vmul.f32 %v356_v30, %v356_v30  ;;  %v362_v35 = vmul.f32 %v358_v31, %v358_v31  ;;  %v1005_v30 = vld [vmem:[#allocation10 + $0x180] sm:$0xff]  ;;  %v1442_v31 = vpack.c.bf16 %v974_v29, %v973_v28  ;;  %v983_v28 = vld [vmem:[#allocation10 + $0xd0] sm:$0xff]  ;;  %v984_v29 = vld [vmem:[#allocation10 + $0xd8] sm:$0xff] }
 0x277   :  { %v363_v36 = vadd.f32 %v361_v33, %v359_v32  ;;  %v1006_v32 = vld [vmem:[#allocation10 + $0x188] sm:$0xff]  ;;  %v957_v33 = vld [vmem:[#allocation10] sm:$0xff] }
 0x278   :  { %v370_v37 = vadd.f32 %v362_v35, %v360_v34  ;;  %v958_v34 = vld [vmem:[#allocation10 + $0x8] sm:$0xff]  ;;  %v1474_v35 = vpack.c.bf16 %v1006_v32, %v1005_v30  ;;  %1443 = vmatprep.subr.bf16.mxu0 %v1442_v31  ;;  %v1015_v30 = vld [vmem:[#allocation10 + $0x1d0] sm:$0xff]  ;;  %v1462_v31 = vpack.c.bf16 %v984_v29, %v983_v28  ;;  %v1016_v32 = vld [vmem:[#allocation10 + $0x1d8] sm:$0xff] }
 0x279   :  { %v364_v38 = vrot.slane %v363_v36, 4 }
 0x27a   :  { %v371_v39 = vrot.slane %v370_v37, 4  ;;  %1475 = vmatprep.subr.bf16.mxu1 %v1474_v35  ;;  %v1494_v35 = vpack.c.bf16 %v1016_v32, %v1015_v30 }
 0x27b   :  { %v365_v40 = vadd.f32 %v364_v38, %v363_v36  ;;  %v1444_v36 = vpack.c.bf16 %v958_v34, %v957_v33  ;;  %v990_v38 = vld [vmem:[#allocation10 + $0x108] sm:$0xff]  ;;  %v967_v33 = vld [vmem:[#allocation10 + $0x50] sm:$0xff]  ;;  %v968_v34 = vld [vmem:[#allocation10 + $0x58] sm:$0xff] }
 0x27c   :  { %v372_v41 = vadd.f32 %v371_v39, %v370_v37  ;;  %v989_v37 = vld [vmem:[#allocation10 + $0x100] sm:$0xff] }
 0x27d   :  { %v366_v42 = vrot.slane %v365_v40, 2  ;;  %v1476_v39 = vpack.c.bf16 %v990_v38, %v989_v37  ;;  %v999_v37 = vld [vmem:[#allocation10 + $0x150] sm:$0xff]  ;;  %v1000_v38 = vld [vmem:[#allocation10 + $0x158] sm:$0xff] }
 0x27e   :  { %v373_v43 = vrot.slane %v372_v41, 2 }
 0x27f   :  { %v367_v44 = vadd.f32 %v366_v42, %v365_v40  ;;  %v975_v40 = vld [vmem:[#allocation10 + $0x90] sm:$0xff] }
 0x280   :  { %v374_v45 = vadd.f32 %v373_v43, %v372_v41  ;;  %v976_v41 = vld [vmem:[#allocation10 + $0x98] sm:$0xff]  ;;  %v1007_v42 = vld [vmem:[#allocation10 + $0x190] sm:$0xff] }
 0x281   :  { %v368_v46 = vrot.slane %v367_v44, 1  ;;  %v1446_v43 = vpack.c.bf16 %v976_v41, %v975_v40  ;;  %v1496_v40 = vpack.c.bf16 %v1000_v38, %v999_v37  ;;  %v986_v41 = vld [vmem:[#allocation10 + $0xe8] sm:$0xff] }
 0x282   :  { %v375_v47 = vrot.slane %v374_v45, 1 }
 0x283   :  { %v369_v48 = vadd.f32 %v368_v46, %v367_v44  ;;  %v1008_v44 = vld [vmem:[#allocation10 + $0x198] sm:$0xff] }
 0x284   :  { %v376_v49 = vadd.f32 %v375_v47, %v374_v45  ;;  %v959_v45 = vld [vmem:[#allocation10 + $0x10] sm:$0xff]  ;;  %v960_v46 = vld [vmem:[#allocation10 + $0x18] sm:$0xff]  ;;  %v1478_v47 = vpack.c.bf16 %v1008_v44, %v1007_v42  ;;  %v1017_v42 = vld [vmem:[#allocation10 + $0x1e0] sm:$0xff] }
 0x285   :  { %v377_v50 = vmul.f32 0.0625, %v369_v48  ;;  %v1448_v48 = vpack.c.bf16 %v960_v46, %v959_v45  ;;  %v969_v46 = vld [vmem:[#allocation10 + $0x60] sm:$0xff] }
 0x286   :  { %v378_v51 = vmul.f32 0.0625, %v376_v49  ;;  %v991_v49 = vld [vmem:[#allocation10 + $0x110] sm:$0xff] }
 0x287   :  { %v379_v52 = vadd.f32 1e-05, %v377_v50  ;;  %v992_v50 = vld [vmem:[#allocation10 + $0x118] sm:$0xff] }
 0x288   :  { %v380_v53 = vadd.f32 1e-05, %v378_v51  ;;  %v1480_v51 = vpack.c.bf16 %v992_v50, %v991_v49  ;;  %v1002_v50 = vld [vmem:[#allocation10 + $0x168] sm:$0xff] }
 0x289   :  { %1523 = vrsqrt.f32 %v379_v52  ;;  %v977_v52 = vld [vmem:[#allocation10 + $0xa0] sm:$0xff] }
 0x28a   :  { %1525 = vrsqrt.f32 %v380_v53  ;;  %v978_v53 = vld [vmem:[#allocation10 + $0xa8] sm:$0xff] }
 0x28b   :  { %v1450_v55 = vpack.c.bf16 %v978_v53, %v977_v52  ;;  %v988_v52 = vld [vmem:[#allocation10 + $0xf8] sm:$0xff] }
 0x293   :  { %v1524_v59 = vpop.eup %1523 }
 0x294   :  { %v1526_v61 = vpop.eup %1525 }
 0x295   :  { %v385_v62 = vcombine.low %v1524_v59, %v1526_v61  ;;  %v962_v59 = vld [vmem:[#allocation10 + $0x28] sm:$0xff]  ;;  %v1482_v61 = vpack.c.bf16 %v1010_v56, %v1009_v54  ;;  %v1020_v56 = vld [vmem:[#allocation10 + $0x1f8] sm:$0xff] }
 0x297   :  { %v392_v63 = vrot.slane %v385_v62, %v1865_v60  ;;  %v1452_v62 = vpack.c.bf16 %v962_v59, %v961_v57  ;;  %v971_v57 = vld [vmem:[#allocation10 + $0x70] sm:$0xff] }
 0x299   :  { %v399_v1 = vrot.slane %v392_v63, %v1865_v60  ;;  %v993_v63 = vld [vmem:[#allocation10 + $0x120] sm:$0xff] }
 0x29b   :  { %v401_v4 = vmul.f32 %v399_v1, %v107_v0  ;;  %v994_v0 = vld [vmem:[#allocation10 + $0x128] sm:$0xff] }
 0x29c   :  { %v1484_v1 = vpack.c.bf16 %v994_v0, %v993_v63  ;;  %v1004_v63 = vld [vmem:[#allocation10 + $0x178] sm:$0xff] }
 0x29d   :  { %v406_v5 = vrot.slane %v401_v4, %v1870_v2  ;;  %v410_v6 = vrot.slane %v401_v4, %v1873_v3  ;;  %v979_v4 = vld [vmem:[#allocation10 + $0xb0] sm:$0xff] }
 0x29f   :  { %v414_v7 = vmul.f32 %v410_v6, %v354_v27  ;;  %v437_v11 = vmul.f32 %v410_v6, %v336_v12  ;;  %v413_v13 = vmul.f32 %v406_v5, %v353_v26  ;;  %v435_v14 = vmul.f32 %v410_v6, %v1852_v9  ;;  %v1011_v6 = vld [vmem:[#allocation10 + $0x1b0] sm:$0xff] }
 0x2a0   :  { %v434_v15 = vmul.f32 %v406_v5, %v1850_v8  ;;  %v436_v16 = vmul.f32 %v406_v5, %v1854_v10  ;;  %v980_v5 = vld [vmem:[#allocation10 + $0xb8] sm:$0xff] }
 0x2a1   :  { %v417_v17 = vcombine.low %v413_v13, %v414_v7  ;;  %v1454_v7 = vpack.c.bf16 %v980_v5, %v979_v4  ;;  %v963_v13 = vld [vmem:[#allocation10 + $0x30] sm:$0xff] }
 0x2a3   :  { %v424_v18 = vrot.slane %v417_v17, %v1865_v60  ;;  %v995_v17 = vld [vmem:[#allocation10 + $0x130] sm:$0xff] }
 0x2a5   :  { %v431_v20 = vrot.slane %v424_v18, %v1865_v60  ;;  %v996_v18 = vld [vmem:[#allocation10 + $0x138] sm:$0xff] }
 0x2a7   :  { %v433_v21 = vsub.f32 %v109_v19, %v431_v20  ;;  %v1488_v19 = vpack.c.bf16 %v996_v18, %v995_v17  ;;  %v981_v20 = vld [vmem:[#allocation10 + $0xc0] sm:$0xff] }
 0x2a9   :  { %v446_v22 = vrot.slane %v433_v21, %v1873_v3  ;;  %v442_v23 = vrot.slane %v433_v21, %v1870_v2  ;;  %v982_v21 = vld [vmem:[#allocation10 + $0xc8] sm:$0xff] }
 0x2ab   :  { %v450_v24 = vadd.f32 %v446_v22, %v435_v14  ;;  %v449_v12 = vadd.f32 %v442_v23, %v434_v15  ;;  %v452_v25 = vadd.f32 %v446_v22, %v437_v11  ;;  %v451_v26 = vadd.f32 %v442_v23, %v436_v16  ;;  %v1012_v11 = vld [vmem:[#allocation10 + $0x1b8] sm:$0xff]  ;;  %v1013_v22 = vld [vmem:[#allocation10 + $0x1c0] sm:$0xff] }
 0x2ac   :  { %v964_v14 = vld [vmem:[#allocation10 + $0x38] sm:$0xff]  ;;  %v1486_v15 = vpack.c.bf16 %v1012_v11, %v1011_v6  ;;  %v1458_v23 = vpack.c.bf16 %v982_v21, %v981_v20 }
 0x2ad   :  { %v454_v9 = vmax.f32 %v450_v24, 0.0  ;;  %v453_v27 = vmax.f32 %v449_v12, 0.0  ;;  %v456_v8 = vmax.f32 %v452_v25, 0.0  ;;  %v455_v10 = vmax.f32 %v451_v26, 0.0  ;;  %v1014_v24 = vld [vmem:[#allocation10 + $0x1c8] sm:$0xff]  ;;  %v965_v12 = vld [vmem:[#allocation10 + $0x40] sm:$0xff] }
 0x2ae   :  { %v1456_v16 = vpack.c.bf16 %v964_v14, %v963_v13  ;;  %v966_v25 = vld [vmem:[#allocation10 + $0x48] sm:$0xff]  ;;  %v1490_v26 = vpack.c.bf16 %v1014_v24, %v1013_v22 }
 0x2af   :  { %649 = vmatprep.mubr.f32.mxu0 %v454_v9  ;;  %726 = vmatprep.mubr.f32.mxu1 %v454_v9  ;;  %v1460_v9 = vpack.c.bf16 %v966_v25, %v965_v12 }
 0x2b0   :  { %650 = vmatmul.mubr.f32.vlgmr.msra.gmra.mrb[2].mxu0 %v453_v27  ;;  %727 = vmatmul.mubr.f32.vlgmr.msra.gmra.mrb[4].mxu1 %v453_v27  ;;  %v997_v27 = vld [vmem:[#allocation10 + $0x140] sm:$0xff] }
 0x2b1   :  { %655 = vmatprep.mubr.f32.mxu0 %v456_v8  ;;  %732 = vmatprep.mubr.f32.mxu1 %v456_v8  ;;  %v998_v8 = vld [vmem:[#allocation10 + $0x148] sm:$0xff] }
 0x2b2   :  { %1445 = vmatpush3.bf16.msra.mxu0 %v1444_v36  ;;  %1477 = vmatpush3.bf16.msra.mxu1 %v1476_v39  ;;  %v1464_v36 = vpack.c.bf16 %v968_v34, %v967_v33  ;;  %v985_v39 = vld [vmem:[#allocation10 + $0xe0] sm:$0xff] }
 0x2b3   :  { %1447 = vmatprep.subr.bf16.mxu0 %v1446_v43  ;;  %1479 = vmatprep.subr.bf16.mxu1 %v1478_v47  ;;  %v1018_v43 = vld [vmem:[#allocation10 + $0x1e8] sm:$0xff]  ;;  %v1466_v44 = vpack.c.bf16 %v986_v41, %v985_v39 }
 0x2b4   :  { %656 = vmatmul.mubr.f32.gmra.mrb[4].mxu0 %v455_v10  ;;  %733 = vmatmul.mubr.f32.gmra.mrb[6].mxu1 %v455_v10  ;;  %v1492_v10 = vpack.c.bf16 %v998_v8, %v997_v27  ;;  %v1498_v45 = vpack.c.bf16 %v1018_v43, %v1017_v42  ;;  %v970_v47 = vld [vmem:[#allocation10 + $0x68] sm:$0xff] }
 0x2b5   :  { %v1468_v49 = vpack.c.bf16 %v970_v47, %v969_v46 }
 0x2b6   :  { %1449 = vmatpush3.bf16.msra.mxu0 %v1448_v48  ;;  %1481 = vmatpush3.bf16.msra.mxu1 %v1480_v51  ;;  %v1001_v48 = vld [vmem:[#allocation10 + $0x160] sm:$0xff]  ;;  %v987_v51 = vld [vmem:[#allocation10 + $0xf0] sm:$0xff] }
 0x2b7   :  { %1451 = vmatprep.subr.bf16.mxu0 %v1450_v55  ;;  %1483 = vmatprep.subr.bf16.mxu1 %v1482_v61  ;;  %v1500_v53 = vpack.c.bf16 %v1002_v50, %v1001_v48  ;;  %v1470_v54 = vpack.c.bf16 %v988_v52, %v987_v51  ;;  %v1019_v55 = vld [vmem:[#allocation10 + $0x1f0] sm:$0xff]  ;;  %v972_v61 = vld [vmem:[#allocation10 + $0x78] sm:$0xff] }
 0x2b8   :  { %v1502_v59 = vpack.c.bf16 %v1020_v56, %v1019_v55  ;;  %v1472_v0 = vpack.c.bf16 %v972_v61, %v971_v57 }
 0x2ba   :  { %1453 = vmatpush3.bf16.msra.mxu0 %v1452_v62  ;;  %1485 = vmatpush3.bf16.msra.mxu1 %v1484_v1  ;;  %v1003_v62 = vld [vmem:[#allocation10 + $0x170] sm:$0xff] }
 0x2bb   :  { %1455 = vmatprep.subr.bf16.mxu0 %v1454_v7  ;;  %1487 = vmatprep.subr.bf16.mxu1 %v1486_v15  ;;  %v1504_v1 = vpack.c.bf16 %v1004_v63, %v1003_v62 }
 0x2be   :  { %1457 = vmatpush3.bf16.msra.mxu0 %v1456_v16  ;;  %1489 = vmatpush3.bf16.msra.mxu1 %v1488_v19 }
 0x2bf   :  { %1459 = vmatprep.subr.bf16.mxu0 %v1458_v23  ;;  %1491 = vmatprep.subr.bf16.mxu1 %v1490_v26 }
 0x2c2   :  { %1461 = vmatpush3.bf16.msra.mxu0 %v1460_v9  ;;  %1493 = vmatpush3.bf16.msra.mxu1 %v1492_v10 }
 0x2c3   :  { %1463 = vmatprep.subr.bf16.mxu0 %v1462_v31  ;;  %1495 = vmatprep.subr.bf16.mxu1 %v1494_v35 }
 0x2c6   :  { %1465 = vmatpush3.bf16.msra.mxu0 %v1464_v36  ;;  %1497 = vmatpush3.bf16.msra.mxu1 %v1496_v40 }
 0x2c7   :  { %1467 = vmatprep.subr.bf16.mxu0 %v1466_v44  ;;  %1499 = vmatprep.subr.bf16.mxu1 %v1498_v45 }
 0x2ca   :  { %1469 = vmatpush3.bf16.msra.mxu0 %v1468_v49  ;;  %1501 = vmatpush3.bf16.msra.mxu1 %v1500_v53 }
 0x2cb   :  { %1471 = vmatprep.subr.bf16.mxu0 %v1470_v54  ;;  %1503 = vmatprep.subr.bf16.mxu1 %v1502_v59 }
 0x2ce   :  { %1473 = vmatpush3.bf16.msra.mxu0 %v1472_v0  ;;  %1505 = vmatpush3.bf16.msra.mxu1 %v1504_v1 }
 0x383   :  { %v1884_v4 = vpop.f32.mrb[2].mxu0  ;;  %v1886_v5 = vpop.f32.mrb[4].mxu1 }
 0x384   :  { %v1888_v6 = vpop.f32.mrb[3].mxu0  ;;  %v1890_v7 = vpop.f32.mrb[5].mxu1 }
 0x387   :  { %v1892_v11 = vpop.f32.mrb[4].mxu0  ;;  %v1894_v13 = vpop.f32.mrb[6].mxu1 }
 0x388   :  { %v739_v14 = vadd.f32 %v1892_v11, %v1884_v4  ;;  %v753_v15 = vadd.f32 %v1894_v13, %v1886_v5  ;;  %v1900_v16 = vpop.f32.mrb[5].mxu0  ;;  %v1902_v17 = vpop.f32.mrb[7].mxu1 }
 0x389   :  { %v746_v18 = vadd.f32 %v1900_v16, %v1888_v6  ;;  %v760_v19 = vadd.f32 %v1902_v17, %v1890_v7 }
 0x38a   :  { %v740_v20 = vrot.slane %v739_v14, 4  ;;  %v754_v21 = vrot.slane %v753_v15, 4 }
 0x38b   :  { %v747_v22 = vrot.slane %v746_v18, 4  ;;  %v761_v23 = vrot.slane %v760_v19, 4 }
 0x38c   :  { %v741_v24 = vadd.f32 %v740_v20, %v739_v14  ;;  %v755_v12 = vadd.f32 %v754_v21, %v753_v15 }
 0x38d   :  { %v748_v25 = vadd.f32 %v747_v22, %v746_v18  ;;  %v762_v26 = vadd.f32 %v761_v23, %v760_v19 }
 0x38e   :  { %v742_v9 = vrot.slane %v741_v24, 2  ;;  %v756_v27 = vrot.slane %v755_v12, 2 }
 0x38f   :  { %v749_v8 = vrot.slane %v748_v25, 2  ;;  %v763_v10 = vrot.slane %v762_v26, 2 }
 0x390   :  { %v743_v28 = vadd.f32 %v742_v9, %v741_v24  ;;  %v757_v29 = vadd.f32 %v756_v27, %v755_v12 }
 0x391   :  { %v750_v30 = vadd.f32 %v749_v8, %v748_v25  ;;  %v764_v31 = vadd.f32 %v763_v10, %v762_v26 }
 0x392   :  { %v744_v32 = vrot.slane %v743_v28, 1  ;;  %v758_v33 = vrot.slane %v757_v29, 1 }
 0x393   :  { %v751_v34 = vrot.slane %v750_v30, 1  ;;  %v765_v35 = vrot.slane %v764_v31, 1 }
 0x394   :  { %v745_v36 = vadd.f32 %v744_v32, %v743_v28  ;;  %v759_v37 = vadd.f32 %v758_v33, %v757_v29 }
 0x395   :  { %v752_v38 = vadd.f32 %v751_v34, %v750_v30  ;;  %v766_v39 = vadd.f32 %v765_v35, %v764_v31 }
 0x396   :  { %v1908_v40 = vmul.f32 0.0625, %v745_v36  ;;  %v1910_v41 = vmul.f32 0.0625, %v759_v37 }
 0x397   :  { %v1912_v42 = vmul.f32 0.0625, %v752_v38  ;;  %v1914_v43 = vmul.f32 0.0625, %v766_v39 }
 0x398   :  { %v771_v44 = vsub.f32 %v1884_v4, %v1908_v40  ;;  %v775_v45 = vsub.f32 %v1892_v11, %v1908_v40  ;;  %v773_v46 = vsub.f32 %v1886_v5, %v1910_v41  ;;  %v777_v47 = vsub.f32 %v1894_v13, %v1910_v41 }
 0x399   :  { %v772_v48 = vsub.f32 %v1888_v6, %v1912_v42  ;;  %v776_v49 = vsub.f32 %v1900_v16, %v1912_v42  ;;  %v774_v50 = vsub.f32 %v1890_v7, %v1914_v43  ;;  %v778_v51 = vsub.f32 %v1902_v17, %v1914_v43 }
 0x39a   :  { %v779_v52 = vmul.f32 %v771_v44, %v771_v44  ;;  %v783_v53 = vmul.f32 %v775_v45, %v775_v45  ;;  %v781_v54 = vmul.f32 %v773_v46, %v773_v46  ;;  %v785_v55 = vmul.f32 %v777_v47, %v777_v47 }
 0x39b   :  { %v780_v56 = vmul.f32 %v772_v48, %v772_v48  ;;  %v784_v57 = vmul.f32 %v776_v49, %v776_v49  ;;  %v782_v59 = vmul.f32 %v774_v50, %v774_v50  ;;  %v786_v61 = vmul.f32 %v778_v51, %v778_v51 }
 0x39c   :  { %v787_v62 = vadd.f32 %v783_v53, %v779_v52  ;;  %v801_v63 = vadd.f32 %v785_v55, %v781_v54 }
 0x39d   :  { %v794_v0 = vadd.f32 %v784_v57, %v780_v56  ;;  %v808_v1 = vadd.f32 %v786_v61, %v782_v59  ;;  %v111_v57 = vld [vmem:[#allocation11 + $0x4] ss:$8 sm:$0xf]  ;;  %v868_v61 = vsub.s32 2, %v1862_v58 }
 0x39e   :  { %v788_v14 = vrot.slane %v787_v62, 4  ;;  %v802_v15 = vrot.slane %v801_v63, 4 }
 0x39f   :  { %v795_v18 = vrot.slane %v794_v0, 4  ;;  %v809_v19 = vrot.slane %v808_v1, 4 }
 0x3a0   :  { %v789_v20 = vadd.f32 %v788_v14, %v787_v62  ;;  %v803_v21 = vadd.f32 %v802_v15, %v801_v63  ;;  %v872_v62 = vsub.s32 3, %v1862_v58 }
 0x3a1   :  { %v796_v22 = vadd.f32 %v795_v18, %v794_v0  ;;  %v810_v23 = vadd.f32 %v809_v19, %v808_v1 }
 0x3a2   :  { %v790_v24 = vrot.slane %v789_v20, 2  ;;  %v804_v12 = vrot.slane %v803_v21, 2 }
 0x3a3   :  { %v797_v25 = vrot.slane %v796_v22, 2  ;;  %v811_v26 = vrot.slane %v810_v23, 2 }
 0x3a4   :  { %v791_v9 = vadd.f32 %v790_v24, %v789_v20  ;;  %v805_v27 = vadd.f32 %v804_v12, %v803_v21 }
 0x3a5   :  { %v798_v8 = vadd.f32 %v797_v25, %v796_v22  ;;  %v812_v10 = vadd.f32 %v811_v26, %v810_v23 }
 0x3a6   :  { %v792_v28 = vrot.slane %v791_v9, 1  ;;  %v806_v29 = vrot.slane %v805_v27, 1 }
 0x3a7   :  { %v799_v30 = vrot.slane %v798_v8, 1  ;;  %v813_v31 = vrot.slane %v812_v10, 1 }
 0x3a8   :  { %v793_v32 = vadd.f32 %v792_v28, %v791_v9  ;;  %v807_v33 = vadd.f32 %v806_v29, %v805_v27 }
 0x3a9   :  { %v800_v34 = vadd.f32 %v799_v30, %v798_v8  ;;  %v814_v35 = vadd.f32 %v813_v31, %v812_v10 }
 0x3aa   :  { %v815_v36 = vmul.f32 0.0625, %v793_v32  ;;  %v817_v37 = vmul.f32 0.0625, %v807_v33 }
 0x3ab   :  { %v816_v38 = vmul.f32 0.0625, %v800_v34  ;;  %v818_v39 = vmul.f32 0.0625, %v814_v35 }
 0x3ac   :  { %v819_v44 = vadd.f32 1e-05, %v815_v36  ;;  %v821_v45 = vadd.f32 1e-05, %v817_v37 }
 0x3ad   :  { %v820_v46 = vadd.f32 1e-05, %v816_v38  ;;  %v822_v47 = vadd.f32 1e-05, %v818_v39 }
 0x3ae   :  { %1527 = vrsqrt.f32 %v819_v44  ;;  %v114_v44 = vld [vmem:[#allocation11 + $0x6] ss:$0 sm:$0xff] }
 0x3af   :  { %1529 = vrsqrt.f32 %v821_v45 }
 0x3b0   :  { %1531 = vrsqrt.f32 %v820_v46 }
 0x3b1   :  { %1533 = vrsqrt.f32 %v822_v47 }
 0x3b8   :  { %v1528_v48 = vpop.eup %1527 }
 0x3b9   :  { %v1530_v49 = vpop.eup %1529 }
 0x3ba   :  { %v1532_v50 = vpop.eup %1531 }
 0x3bb   :  { %v1534_v51 = vpop.eup %1533  ;;  %v831_v52 = vcombine.low %v1528_v48, %v1532_v50 }
 0x3bc   :  { %v832_v53 = vcombine.low %v1530_v49, %v1534_v51 }
 0x3bd   :  { %v839_v54 = vrot.slane %v831_v52, %v1865_v60 }
 0x3be   :  { %v846_v55 = vrot.slane %v832_v53, %v1865_v60 }
 0x3c0   :  { %v847_v56 = vcombine.low %v839_v54, %v846_v55 }
 0x3c2   :  { %v854_v59 = vrot.slane %v847_v56, %v1865_v60 }
 0x3c4   :  { %v856_v63 = vmul.f32 %v854_v59, %v111_v57 }
 0x3c6   :  { %v869_v0 = vrot.slane %v856_v63, %v868_v61  ;;  %v873_v1 = vrot.slane %v856_v63, %v872_v62  ;;  %v861_v14 = vrot.slane %v856_v63, %v1870_v2  ;;  %v865_v15 = vrot.slane %v856_v63, %v1873_v3 }
 0x3c8   :  { %v880_v18 = vmul.f32 %v869_v0, %v1910_v41  ;;  %v881_v19 = vmul.f32 %v873_v1, %v1914_v43  ;;  %v919_v20 = vmul.f32 %v873_v1, %v1902_v17  ;;  %v878_v21 = vmul.f32 %v861_v14, %v1908_v40 }
 0x3c9   :  { %v879_v22 = vmul.f32 %v865_v15, %v1912_v42  ;;  %v913_v23 = vmul.f32 %v865_v15, %v1888_v6  ;;  %v915_v58 = vmul.f32 %v873_v1, %v1890_v7  ;;  %v912_v24 = vmul.f32 %v861_v14, %v1884_v4  ;;  %v113_v6 = vld [vmem:[#allocation11 + $0x5] ss:$8 sm:$0xf] }
 0x3ca   :  { %v887_v12 = vcombine.low %v880_v18, %v881_v19  ;;  %v914_v25 = vmul.f32 %v869_v0, %v1886_v5  ;;  %v917_v26 = vmul.f32 %v865_v15, %v1900_v16  ;;  %v916_v41 = vmul.f32 %v861_v14, %v1892_v11 }
 0x3cb   :  { %v886_v43 = vcombine.low %v878_v21, %v879_v22  ;;  %v918_v17 = vmul.f32 %v869_v0, %v1894_v13 }
 0x3cc   :  { %v901_v40 = vrot.slane %v887_v12, %v1865_v60 }
 0x3cd   :  { %v894_v42 = vrot.slane %v886_v43, %v1865_v60 }
 0x3cf   :  { %v902_v9 = vcombine.low %v894_v42, %v901_v40 }
 0x3d1   :  { %v909_v7 = vrot.slane %v902_v9, %v1865_v60 }
 0x3d3   :  { %v911_v27 = vsub.f32 %v113_v6, %v909_v7 }
 0x3d5   :  { %v928_v4 = vrot.slane %v911_v27, %v1873_v3  ;;  %v936_v8 = vrot.slane %v911_v27, %v872_v62  ;;  %v924_v5 = vrot.slane %v911_v27, %v1870_v2  ;;  %v932_v16 = vrot.slane %v911_v27, %v868_v61 }
 0x3d7   :  { %v942_v10 = vadd.f32 %v928_v4, %v913_v23  ;;  %v944_v11 = vadd.f32 %v936_v8, %v915_v58  ;;  %v941_v28 = vadd.f32 %v924_v5, %v912_v24  ;;  %v943_v29 = vadd.f32 %v932_v16, %v914_v25 }
 0x3d8   :  { %v946_v13 = vadd.f32 %v928_v4, %v917_v26  ;;  %v948_v30 = vadd.f32 %v936_v8, %v919_v20  ;;  %v945_v31 = vadd.f32 %v924_v5, %v916_v41  ;;  %v947_v32 = vadd.f32 %v932_v16, %v918_v17 }
 0x3d9   :  { %v950_v33 = vmax.f32 %v942_v10, 0.0  ;;  %v952_v34 = vmax.f32 %v944_v11, 0.0  ;;  %v949_v35 = vmax.f32 %v941_v28, 0.0  ;;  %v951_v36 = vmax.f32 %v943_v29, 0.0 }
 0x3da   :  { %v954_v60 = vmax.f32 %v946_v13, 0.0  ;;  %v956_v3 = vmax.f32 %v948_v30, 0.0  ;;  %v953_v2 = vmax.f32 %v945_v31, 0.0  ;;  %v955_v37 = vmax.f32 %v947_v32, 0.0 }
 0x3db   :  { %1085 = vmatprep.mubr.f32.mxu0 %v950_v33  ;;  %1160 = vmatprep.mubr.f32.mxu1 %v952_v34 }
 0x3dc   :  { %1086 = vmatmul.mubr.f32.vlgmr.msra.gmra.mrb[6].mxu0 %v949_v35  ;;  %1161 = vmatmul.mubr.f32.vlgmr.msra.gmra.mrb[8].mxu1 %v951_v36 }
 0x3dd   :  { %1090 = vmatprep.mubr.f32.mxu0 %v954_v60  ;;  %1165 = vmatprep.mubr.f32.mxu1 %v956_v3 }
 0x3e0   :  { %1091 = vmatmul.mubr.f32.gmra.mrb[8].mxu0 %v953_v2  ;;  %1166 = vmatmul.mubr.f32.gmra.mrb[10].mxu1 %v955_v37 }
 0x4af   :  { %v1235_v38 = vpop.f32.mrb[6].mxu0  ;;  %v1273_v39 = vpop.f32.mrb[8].mxu1 }
 0x4b0   :  { %v1236_v45 = vpop.f32.mrb[7].mxu0  ;;  %v1274_v46 = vpop.f32.mrb[9].mxu1 }
 0x4b1   :  { %v1237_v47 = vadd.f32 %v1236_v45, %v1235_v38  ;;  %v1275_v48 = vadd.f32 %v1274_v46, %v1273_v39 }
 0x4b3   :  { %v1088_v49 = vadd.f32 %v1237_v47, %v114_v44  ;;  %v1238_v50 = vpop.f32.mrb[8].mxu0  ;;  %v1276_v51 = vpop.f32.mrb[10].mxu1 }
 0x4b4   :  { %v1239_v52 = vpop.f32.mrb[9].mxu0  ;;  %v1277_v53 = vpop.f32.mrb[11].mxu1 }
 0x4b5   :  { %v1163_v54 = vadd.f32 %v1275_v48, %v1088_v49  ;;  %v1240_v55 = vadd.f32 %v1239_v52, %v1238_v50  ;;  %v1278_v56 = vadd.f32 %v1277_v53, %v1276_v51 }
 0x4b7   :  { %1171 = vst [vmem:[#allocation13] sm:$0xff] %v1163_v54  ;;  %v1093_v57 = vadd.f32 %v1240_v55, %v114_v44 }
 0x4b9   :  { %v1168_v59 = vadd.f32 %v1278_v56, %v1093_v57 }
 0x4bb   :  { %1172 = vst [vmem:[#allocation13 + $0x8] sm:$0xff] %v1168_v59 }
 0x4bc   :  { %1678 = shalt.err (!%p1675_p10)
}
 0x4bd   :  { %s1679_s27 = scalar_lea.hbm %s1977_s6, 256 }
 0x4be   :  { %p1680_p11 = scmp.ne.s32.totalorder %s1977_s6, %s1679_s27  ;;  %p1683_p12 = scmp.lt.u32.totalorder %s1679_s27, %s1977_s6 }
 0x4c0   :  { %p1685_p13 = pnand %p1683_p12, %p1680_p11 }
 0x4c2   :  { %1688 = shalt.err (!%p1685_p13)
}
 0x4c3   :  { %1184 = dma.vmem_to_hbm [thread:$0]  %s1179_s22, 256, %s1977_s6, [#allocation4], %s1701_s9, %s1701_s9, %s1702_s10  }
 0x4c4   :  { %1697 = dma.done.wait [#allocation4], 256  }
 0x4c5   :  { %1698 = vsyncadd [#allocation4], 4294967040 }
 0x4c6   :  { %1188 = vsyncpa [#allocation3], 1 }
 0x4c7   :  { %1189 = vsyncpa [#allocation6], 1 }
 0x4c8   :  { %1190 = vsyncpa [#allocation9], 1 }
 0x4c9   :  { %1191 = vsyncpa [#allocation12], 1 }
 0x4ca   :  { %1192 = vsyncpa [#allocation4], 1 }

</bundles_post_ra>
